<compile_context>
chip_gen: v7x
topology: tpu7x:2x2x1
jax: 0.10.0
libtpu: 0.0.40
codegen_flags: <defaults>
</compile_context>

<pallas_src>
import functools

import jax
import jax.numpy as jnp
import numpy as np
from jax import lax
from jax.experimental import pallas as pl
from jax.experimental.pallas import tpu as pltpu

EPS = 1e-5


# --------------------------- Pallas kernels ---------------------------------

def _bn_relu_1x1_bn_relu_kernel(*refs, n_seg):
    """Fused BN1 -> ReLU -> 1x1 conv -> BN2 -> ReLU over a row tile of pixels.

    refs = [x_0, s1_0, b1_0, ..., x_{n-1}, s1_{n-1}, b1_{n-1}, w1, s2, b2, out]
    Segments are the previously produced feature chunks (dense connectivity without
    an HBM concat): they are BN+ReLU'd in f32, concatenated in-register along the
    channel axis, and fed to ONE bf16 MXU dot against the full (Ctot, C1) w1.
    x_i: (TR, C_i) f32/bf16, w1: (Ctot, C1) bf16, scales/biases: (1, C) f32,
    out: (TR, C1) bf16.
    """
    o_ref = refs[-1]
    w1_ref = refs[3 * n_seg]
    s2_ref = refs[3 * n_seg + 1]
    b2_ref = refs[3 * n_seg + 2]

    segs = []
    for i in range(n_seg):
        x_ref, s_ref, b_ref = refs[3 * i:3 * i + 3]
        segs.append(jnp.maximum(
            x_ref[...].astype(jnp.float32) * s_ref[...] + b_ref[...], 0.0))
    a_cat = segs[0] if n_seg == 1 else jnp.concatenate(segs, axis=-1)

    acc = jnp.dot(a_cat.astype(jnp.bfloat16), w1_ref[...],        # single bf16 MXU dot
                  preferred_element_type=jnp.float32)
    o_ref[...] = jnp.maximum(acc * s2_ref[...] + b2_ref[...], 0.0).astype(o_ref.dtype)


def _conv3x3_se_kernel(a_ref, w9_ref, wse1_ref, wse2_ref, o_ref, pad_ref, *, H, W, Wp):
    """Fused 3x3 'same' conv + Squeeze-Excite for one batch element.

    a_ref:   (1, H*W, C1) bf16 -- pre-activated features (from kernel 1)
    w9_ref:  (9, C1, Cg) bf16  -- 3x3 conv taps, k = 3*dy + dx
    wse1/2:  SE FC weights, f32 (negligible compute)
    o_ref:   (1, H*W, Cg) bf16 -- gated layer output y
    pad_ref: VMEM bf16 scratch ((H+4)*Wp, C1): flattened padded image with row pitch
             Wp (rounded to a sublane multiple).  Data row y is LEFT-justified at flat
             rows [(y+2)*Wp, (y+2)*Wp + W); columns [W, Wp) of each data row are zero
             (carried inside the stored slab), and the 2 leading / 2 trailing row
             regions are zeroed every step, so no whole-scratch zero pass and no
             cross-step persistence assumption.
    """
    C1 = a_ref.shape[2]
    Cg = o_ref.shape[2]
    HWp = H * Wp

    # Zero only the halo row regions (4*Wp rows total).
    pad_ref[0:2 * Wp, :] = jnp.zeros((2 * Wp, C1), pad_ref.dtype)
    pad_ref[(H + 2) * Wp:(H + 4) * Wp, :] = jnp.zeros((2 * Wp, C1), pad_ref.dtype)

    # One aligned slab store for the interior: data columns [0, W), zero columns
    # [W, Wp).  Build in f32 so the axis-1 concat seam (at W, a multiple of 8) is
    # sublane-aligned; single cast to bf16 at the store.
    a = a_ref[0].astype(jnp.float32).reshape(H, W, C1)
    slab = jnp.concatenate([a, jnp.zeros((H, Wp - W, C1), jnp.float32)], axis=1)
    pad_ref[2 * Wp:(H + 2) * Wp, :] = slab.reshape(HWp, C1).astype(pad_ref.dtype)

    # 3x3 conv as 9 shifted 2-D matmuls straight off the bf16 scratch (direct ref
    # slices, no per-tap cast, no materialized value-slice copies).  Output pixel
    # (y, x) lives in acc row i = y*Wp + x; tap (dy, dx) reads flat index
    # (y+dy+1)*Wp + (x+dx-1) = i + (dy+1)*Wp + dx - 1, which is the data element
    # a2[y+dy-1, x+dx-1] or a zero halo element.
    acc = jnp.zeros((HWp, Cg), jnp.float32)
    for dy in range(3):
        for dx in range(3):
            off = (dy + 1) * Wp + dx - 1
            acc = acc + jnp.dot(pad_ref[off:off + HWp, :], w9_ref[3 * dy + dx],
                                preferred_element_type=jnp.float32)

    yv = acc.reshape(H, Wp, Cg)[:, :W, :].reshape(H * W, Cg)      # drop junk columns

    # SE: global average pool -> FC -> ReLU -> FC -> sigmoid -> channel gate (f32).
    s = jnp.sum(yv, axis=0, keepdims=True) * (1.0 / (H * W))
    t = jnp.maximum(jnp.dot(s, wse1_ref[...], preferred_element_type=jnp.float32), 0.0)
    z = jax.nn.sigmoid(jnp.dot(t, wse2_ref[...], preferred_element_type=jnp.float32))

    o_ref[0] = (yv * z).astype(o_ref.dtype)


# --------------------------- wrappers ----------------------------------------

def _pick_row_tile(n):
    """Largest tile <= 2048 that divides n, is a multiple of 8, and (when possible)
    leaves a >=2-step grid so the parallel axis can shard / pipeline."""
    for t in (2048, 1024, 512, 256, 128, 64, 32, 16, 8):
        if t <= max(8, n // 2) and n % t == 0:
            return t
    return n


def _dense_layer_y(feats, p):
    """One _DenseLayer's new features y = (B,H,W,growth) in bf16, from the list of
    previously produced NHWC feature chunks (dense connectivity, no HBM concat)."""
    B, H, W, _ = feats[0].shape
    BHW = B * H * W
    C1 = p["w1"].shape[1]
    Cg = p["w2"].shape[3]

    # Fold BN running stats into scale/bias (inference-mode BN).
    s1 = p["gamma1"] / jnp.sqrt(p["var1"] + EPS)
    b1 = p["beta1"] - p["mean1"] * s1
    s2 = p["gamma2"] / jnp.sqrt(p["var2"] + EPS)
    b2 = p["beta2"] - p["mean2"] * s2

    seg_sizes = [f.shape[-1] for f in feats]
    offs = np.cumsum([0] + seg_sizes)
    n_seg = len(feats)
    Ctot = int(offs[-1])

    TR = _pick_row_tile(BHW)
    grid_rows = BHW // TR

    args, in_specs = [], []
    for i, f in enumerate(feats):
        cs = seg_sizes[i]
        lo, hi = int(offs[i]), int(offs[i + 1])
        args += [f.reshape(BHW, cs), s1[lo:hi][None, :], b1[lo:hi][None, :]]
        in_specs += [
            pl.BlockSpec((TR, cs), lambda r: (r, 0)),
            pl.BlockSpec((1, cs), lambda r: (0, 0)),
            pl.BlockSpec((1, cs), lambda r: (0, 0)),
        ]
    args += [p["w1"].astype(jnp.bfloat16), s2[None, :], b2[None, :]]
    in_specs += [pl.BlockSpec((Ctot, C1), lambda r: (0, 0)),
                 pl.BlockSpec((1, C1), lambda r: (0, 0)),
                 pl.BlockSpec((1, C1), lambda r: (0, 0))]

    # (1) BN -> ReLU -> 1x1 conv -> BN -> ReLU, row-tiled + pipelined; a2 in bf16.
    a2 = pl.pallas_call(
        functools.partial(_bn_relu_1x1_bn_relu_kernel, n_seg=n_seg),
        out_shape=jax.ShapeDtypeStruct((BHW, C1), jnp.bfloat16),
        grid=(grid_rows,),
        in_specs=in_specs,
        out_specs=pl.BlockSpec((TR, C1), lambda r: (r, 0)),
        compiler_params=pltpu.CompilerParams(dimension_semantics=("parallel",)),
    )(*args)

    # (2) fused 3x3 conv + SE gate, one batch element per grid step; padding is
    #     built in a bf16 VMEM scratch inside the kernel.  Output is a bf16
    #     (B, H*W, Cg) slab; the NHWC reshape below is free.
    a2s = a2.reshape(B, H * W, C1)
    w9 = p["w2"].reshape(9, C1, Cg).astype(jnp.bfloat16)
    Wp = -(-(W + 2) // 8) * 8                 # row pitch, sublane-aligned
    y = pl.pallas_call(
        functools.partial(_conv3x3_se_kernel, H=H, W=W, Wp=Wp),
        out_shape=jax.ShapeDtypeStruct((B, H * W, Cg), jnp.bfloat16),
        grid=(B,),
        in_specs=[
            pl.BlockSpec((1, H * W, C1), lambda b: (b, 0, 0)),
            pl.BlockSpec((9, C1, Cg), lambda b: (0, 0, 0)),
            pl.BlockSpec(p["wse1"].shape, lambda b: (0, 0)),
            pl.BlockSpec(p["wse2"].shape, lambda b: (0, 0)),
        ],
        out_specs=pl.BlockSpec((1, H * W, Cg), lambda b: (b, 0, 0)),
        scratch_shapes=[pltpu.VMEM(((H + 4) * Wp, C1), jnp.bfloat16)],
        compiler_params=pltpu.CompilerParams(dimension_semantics=("parallel",)),
    )(a2s, w9, p["wse1"], p["wse2"])

    # drop_rate == 0 -> nn.Dropout is the identity.
    return y.reshape(B, H, W, Cg)


def dense_block(x, params):
    """DenseNet block: each layer consumes all previous feature chunks; one concat
    at the very end assembles the block output (no per-layer concat copies)."""
    feats = [x]
    for p in params:
        feats.append(_dense_layer_y(feats, p))
    return jnp.concatenate([f.astype(jnp.float32) for f in feats], axis=-1)


# --------------------------- pure-JAX reference -------------------------------

def ref_dense_block(x, params):
    hi = lax.Precision.HIGHEST
    for p in params:
        s1 = p["gamma1"] / jnp.sqrt(p["var1"] + EPS)
        b1 = p["beta1"] - p["mean1"] * s1
        a = jnp.maximum(x * s1 + b1, 0.0)
        h = jnp.einsum("bhwc,cd->bhwd", a, p["w1"], precision=hi)
        s2 = p["gamma2"] / jnp.sqrt(p["var2"] + EPS)
        b2 = p["beta2"] - p["mean2"] * s2
        a2 = jnp.maximum(h * s2 + b2, 0.0)
        y = lax.conv_general_dilated(
            a2, p["w2"], window_strides=(1, 1), padding="SAME",
            dimension_numbers=("NHWC", "HWIO", "NHWC"), precision=hi)
        s = jnp.mean(y, axis=(1, 2))
        t = jnp.maximum(jnp.dot(s, p["wse1"], precision=hi), 0.0)
        z = jax.nn.sigmoid(jnp.dot(t, p["wse2"], precision=hi))
        y = y * z[:, None, None, :]
        x = jnp.concatenate([x, y], axis=-1)
    return x


# --------------------------- parameter init -----------------------------------

def init_params(key, num_layers, num_input_features, bn_size, growth, reduction=16):
    params = []
    cin = num_input_features
    for _ in range(num_layers):
        c1 = bn_size * growth
        cr = growth // reduction
        key, *ks = jax.random.split(key, 13)
        params.append(dict(
            gamma1=1.0 + 0.1 * jax.random.normal(ks[0], (cin,), jnp.float32),
            beta1=0.1 * jax.random.normal(ks[1], (cin,), jnp.float32),
            mean1=0.1 * jax.random.normal(ks[2], (cin,), jnp.float32),
            var1=jax.random.uniform(ks[3], (cin,), jnp.float32, 0.5, 1.5),
            w1=jax.random.normal(ks[4], (cin, c1), jnp.float32) / np.sqrt(cin),
            gamma2=1.0 + 0.1 * jax.random.normal(ks[5], (c1,), jnp.float32),
            beta2=0.1 * jax.random.normal(ks[6], (c1,), jnp.float32),
            mean2=0.1 * jax.random.normal(ks[7], (c1,), jnp.float32),
            var2=jax.random.uniform(ks[8], (c1,), jnp.float32, 0.5, 1.5),
            w2=jax.random.normal(ks[9], (3, 3, c1, growth), jnp.float32) / np.sqrt(9 * c1),
            wse1=jax.random.normal(ks[10], (growth, cr), jnp.float32) / np.sqrt(growth),
            wse2=jax.random.normal(ks[11], (cr, growth), jnp.float32) / np.sqrt(cr),
        ))
        cin += growth
    return params


# --------------------------- main ----------------------------------------------

if __name__ == "__main__":
    B, C0, H, W = 2, 16, 8, 8                 # small NCHW input: (2, 16, 8, 8)
    num_layers, bn_size, growth = 2, 2, 16    # growth >= 16 so SE hidden dim >= 1

    key = jax.random.PRNGKey(0)
    kx, kp = jax.random.split(key)
    x_nchw = jax.random.normal(kx, (B, C0, H, W), jnp.float32)
    x = jnp.transpose(x_nchw, (0, 2, 3, 1))   # -> NHWC
    params = init_params(kp, num_layers, C0, bn_size, growth)

    out = jax.jit(dense_block)(x, params)
    out = jax.block_until_ready(out)

    ref = ref_dense_block(x, params)
    assert out.shape == (B, H, W, C0 + num_layers * growth), out.shape
    # bf16 MXU inputs / bf16 feature storage with f32 accumulation vs f32 reference.
    np.testing.assert_allclose(np.asarray(out), np.asarray(ref), rtol=3e-2, atol=3e-2)
    print("KERNEL_OK")
</pallas_src>

<mosaic_0001>
module attributes {stable_mosaic.version = 11 : i64} {
  func.func @_bn_relu_1x1_bn_relu_kernel(%arg0: i32, %arg1: memref<64x16xf32, #tpu.memory_space<vmem>>, %arg2: memref<1x16xf32, #tpu.memory_space<vmem>>, %arg3: memref<1x16xf32, #tpu.memory_space<vmem>>, %arg4: memref<16x32xbf16, #tpu.memory_space<vmem>>, %arg5: memref<1x32xf32, #tpu.memory_space<vmem>>, %arg6: memref<1x32xf32, #tpu.memory_space<vmem>>, %arg7: memref<64x32xbf16, #tpu.memory_space<vmem>>) attributes {dimension_semantics = [#tpu.dimension_semantics<parallel>], iteration_bounds = array<i64: 2>, scalar_prefetch = 0 : i64, scratch_operands = 0 : i64, tpu.core_type = #tpu.core_type<tc>, window_params = [{transform_indices = @transform_0, window_bounds = array<i64: 64, 16>}, {pipeline_mode = #tpu.pipeline_mode<synchronous>, transform_indices = @transform_1, window_bounds = array<i64: 1, 16>}, {pipeline_mode = #tpu.pipeline_mode<synchronous>, transform_indices = @transform_2, window_bounds = array<i64: 1, 16>}, {pipeline_mode = #tpu.pipeline_mode<synchronous>, transform_indices = @transform_3, window_bounds = array<i64: 16, 32>}, {pipeline_mode = #tpu.pipeline_mode<synchronous>, transform_indices = @transform_4, window_bounds = array<i64: 1, 32>}, {pipeline_mode = #tpu.pipeline_mode<synchronous>, transform_indices = @transform_5, window_bounds = array<i64: 1, 32>}, {transform_indices = @transform_6, window_bounds = array<i64: 64, 32>}]} {
    %c0 = arith.constant 0 : index
    %c0_0 = arith.constant 0 : index
    %0 = vector.load %arg1[%c0, %c0_0] : memref<64x16xf32, #tpu.memory_space<vmem>>, vector<64x16xf32>
    %c0_1 = arith.constant 0 : index
    %c0_2 = arith.constant 0 : index
    %1 = vector.load %arg2[%c0_1, %c0_2] : memref<1x16xf32, #tpu.memory_space<vmem>>, vector<1x16xf32>
    %2 = vector.broadcast %1 : vector<1x16xf32> to vector<64x16xf32>
    %3 = arith.mulf %0, %2 : vector<64x16xf32>
    %c0_3 = arith.constant 0 : index
    %c0_4 = arith.constant 0 : index
    %4 = vector.load %arg3[%c0_3, %c0_4] : memref<1x16xf32, #tpu.memory_space<vmem>>, vector<1x16xf32>
    %5 = vector.broadcast %4 : vector<1x16xf32> to vector<64x16xf32>
    %6 = arith.addf %3, %5 : vector<64x16xf32>
    %cst = arith.constant 0.000000e+00 : f32
    %7 = vector.broadcast %cst : f32 to vector<64x16xf32>
    %8 = arith.maximumf %6, %7 : vector<64x16xf32>
    %9 = arith.truncf %8 : vector<64x16xf32> to vector<64x16xbf16>
    %c0_5 = arith.constant 0 : index
    %c0_6 = arith.constant 0 : index
    %10 = vector.load %arg4[%c0_5, %c0_6] : memref<16x32xbf16, #tpu.memory_space<vmem>>, vector<16x32xbf16>
    %cst_7 = arith.constant dense<0.000000e+00> : vector<64x32xf32>
    %11 = tpu.matmul %9, %10, %cst_7 {dimension_numbers = #tpu.dot_dimension_numbers<[1], [0], [0], [1], [0, 0, 1, 1], [], []>} : vector<64x16xbf16>, vector<16x32xbf16>, vector<64x32xf32> -> vector<64x32xf32>
    %c0_8 = arith.constant 0 : index
    %c0_9 = arith.constant 0 : index
    %12 = vector.load %arg5[%c0_8, %c0_9] : memref<1x32xf32, #tpu.memory_space<vmem>>, vector<1x32xf32>
    %13 = vector.broadcast %12 : vector<1x32xf32> to vector<64x32xf32>
    %14 = arith.mulf %11, %13 : vector<64x32xf32>
    %c0_10 = arith.constant 0 : index
    %c0_11 = arith.constant 0 : index
    %15 = vector.load %arg6[%c0_10, %c0_11] : memref<1x32xf32, #tpu.memory_space<vmem>>, vector<1x32xf32>
    %16 = vector.broadcast %15 : vector<1x32xf32> to vector<64x32xf32>
    %17 = arith.addf %14, %16 : vector<64x32xf32>
    %cst_12 = arith.constant 0.000000e+00 : f32
    %18 = vector.broadcast %cst_12 : f32 to vector<64x32xf32>
    %19 = arith.maximumf %17, %18 : vector<64x32xf32>
    %20 = arith.truncf %19 : vector<64x32xf32> to vector<64x32xbf16>
    %c0_13 = arith.constant 0 : index
    %c0_14 = arith.constant 0 : index
    %21 = vector.load %arg7[%c0_13, %c0_14] : memref<64x32xbf16, #tpu.memory_space<vmem>>, vector<64x32xbf16>
    tpu.vector_store %arg7[%c0_13, %c0_14], %20 {strides = array<i32>} : memref<64x32xbf16, #tpu.memory_space<vmem>>, vector<64x32xbf16>,
    return
  }
  func.func @transform_0(%arg0: i32) -> (i32, i32) {
    %c0_i32 = arith.constant 0 : i32
    %c0_i32_0 = arith.constant 0 : i32
    return %arg0, %c0_i32 : i32, i32
  }
  func.func @transform_1(%arg0: i32) -> (i32, i32) {
    %c0_i32 = arith.constant 0 : i32
    %c0_i32_0 = arith.constant 0 : i32
    %c0_i32_1 = arith.constant 0 : i32
    return %c0_i32, %c0_i32_0 : i32, i32
  }
  func.func @transform_2(%arg0: i32) -> (i32, i32) {
    %c0_i32 = arith.constant 0 : i32
    %c0_i32_0 = arith.constant 0 : i32
    %c0_i32_1 = arith.constant 0 : i32
    return %c0_i32, %c0_i32_0 : i32, i32
  }
  func.func @transform_3(%arg0: i32) -> (i32, i32) {
    %c0_i32 = arith.constant 0 : i32
    %c0_i32_0 = arith.constant 0 : i32
    %c0_i32_1 = arith.constant 0 : i32
    return %c0_i32, %c0_i32_0 : i32, i32
  }
  func.func @transform_4(%arg0: i32) -> (i32, i32) {
    %c0_i32 = arith.constant 0 : i32
    %c0_i32_0 = arith.constant 0 : i32
    %c0_i32_1 = arith.constant 0 : i32
    return %c0_i32, %c0_i32_0 : i32, i32
  }
  func.func @transform_5(%arg0: i32) -> (i32, i32) {
    %c0_i32 = arith.constant 0 : i32
    %c0_i32_0 = arith.constant 0 : i32
    %c0_i32_1 = arith.constant 0 : i32
    return %c0_i32, %c0_i32_0 : i32, i32
  }
  func.func @transform_6(%arg0: i32) -> (i32, i32) {
    %c0_i32 = arith.constant 0 : i32
    %c0_i32_0 = arith.constant 0 : i32
    return %arg0, %c0_i32 : i32, i32
  }
}

module attributes {stable_mosaic.version = 11 : i64} {
  func.func @_conv3x3_se_kernel(%arg0: i32, %arg1: memref<1x64x32xbf16, #tpu.memory_space<vmem>>, %arg2: memref<9x32x16xbf16, #tpu.memory_space<vmem>>, %arg3: memref<16x1xf32, #tpu.memory_space<vmem>>, %arg4: memref<1x16xf32, #tpu.memory_space<vmem>>, %arg5: memref<1x64x16xbf16, #tpu.memory_space<vmem>>, %arg6: memref<192x32xbf16, #tpu.memory_space<vmem>>) attributes {dimension_semantics = [#tpu.dimension_semantics<parallel>], iteration_bounds = array<i64: 2>, scalar_prefetch = 0 : i64, scratch_operands = 1 : i64, tpu.core_type = #tpu.core_type<tc>, window_params = [{transform_indices = @transform_0, window_bounds = array<i64: 1, 64, 32>}, {pipeline_mode = #tpu.pipeline_mode<synchronous>, transform_indices = @transform_1, window_bounds = array<i64: 9, 32, 16>}, {pipeline_mode = #tpu.pipeline_mode<synchronous>, transform_indices = @transform_2, window_bounds = array<i64: 16, 1>}, {pipeline_mode = #tpu.pipeline_mode<synchronous>, transform_indices = @transform_3, window_bounds = array<i64: 1, 16>}, {transform_indices = @transform_4, window_bounds = array<i64: 1, 64, 16>}]} {
    %cst = arith.constant 0.000000e+00 : bf16
    %0 = vector.broadcast %cst : bf16 to vector<32x32xbf16>
    %c0 = arith.constant 0 : index
    %c0_0 = arith.constant 0 : index
    %1 = vector.load %arg6[%c0, %c0_0] : memref<192x32xbf16, #tpu.memory_space<vmem>>, vector<32x32xbf16>
    tpu.vector_store %arg6[%c0, %c0_0], %0 {strides = array<i32>} : memref<192x32xbf16, #tpu.memory_space<vmem>>, vector<32x32xbf16>,
    %cst_1 = arith.constant 0.000000e+00 : bf16
    %2 = vector.broadcast %cst_1 : bf16 to vector<32x32xbf16>
    %c160 = arith.constant 160 : index
    %c0_2 = arith.constant 0 : index
    %3 = vector.load %arg6[%c160, %c0_2] : memref<192x32xbf16, #tpu.memory_space<vmem>>, vector<32x32xbf16>
    tpu.vector_store %arg6[%c160, %c0_2], %2 {strides = array<i32>} : memref<192x32xbf16, #tpu.memory_space<vmem>>, vector<32x32xbf16>,
    %c0_3 = arith.constant 0 : index
    %c0_4 = arith.constant 0 : index
    %c0_5 = arith.constant 0 : index
    %4 = vector.load %arg1[%c0_3, %c0_4, %c0_5] : memref<1x64x32xbf16, #tpu.memory_space<vmem>>, vector<1x64x32xbf16>
    %5 = vector.shape_cast %4 : vector<1x64x32xbf16> to vector<64x32xbf16>
    %6 = arith.extf %5 : vector<64x32xbf16> to vector<64x32xf32>
    %7 = vector.shape_cast %6 : vector<64x32xf32> to vector<8x8x32xf32>
    %cst_6 = arith.constant 0.000000e+00 : f32
    %8 = vector.broadcast %cst_6 : f32 to vector<8x8x32xf32>
    %9 = tpu.concatenate %7, %8 in 1 : vector<8x8x32xf32>, vector<8x8x32xf32> -> vector<8x16x32xf32>
    %10 = vector.shape_cast %9 : vector<8x16x32xf32> to vector<128x32xf32>
    %11 = arith.truncf %10 : vector<128x32xf32> to vector<128x32xbf16>
    %c32 = arith.constant 32 : index
    %c0_7 = arith.constant 0 : index
    %12 = vector.load %arg6[%c32, %c0_7] : memref<192x32xbf16, #tpu.memory_space<vmem>>, vector<128x32xbf16>
    tpu.vector_store %arg6[%c32, %c0_7], %11 {strides = array<i32>} : memref<192x32xbf16, #tpu.memory_space<vmem>>, vector<128x32xbf16>,
    %cst_8 = arith.constant 0.000000e+00 : f32
    %13 = vector.broadcast %cst_8 : f32 to vector<128x16xf32>
    %c15 = arith.constant 15 : index
    %c0_9 = arith.constant 0 : index
    %14 = vector.load %arg6[%c15, %c0_9] : memref<192x32xbf16, #tpu.memory_space<vmem>>, vector<128x32xbf16>
    %c0_10 = arith.constant 0 : index
    %c0_11 = arith.constant 0 : index
    %c0_12 = arith.constant 0 : index
    %15 = vector.load %arg2[%c0_10, %c0_11, %c0_12] : memref<9x32x16xbf16, #tpu.memory_space<vmem>>, vector<1x32x16xbf16>
    %16 = vector.shape_cast %15 : vector<1x32x16xbf16> to vector<32x16xbf16>
    %cst_13 = arith.constant dense<0.000000e+00> : vector<128x16xf32>
    %17 = tpu.matmul %14, %16, %cst_13 {dimension_numbers = #tpu.dot_dimension_numbers<[1], [0], [0], [1], [0, 0, 1, 1], [], []>} : vector<128x32xbf16>, vector<32x16xbf16>, vector<128x16xf32> -> vector<128x16xf32>
    %18 = arith.addf %13, %17 : vector<128x16xf32>
    %c16 = arith.constant 16 : index
    %c0_14 = arith.constant 0 : index
    %19 = vector.load %arg6[%c16, %c0_14] : memref<192x32xbf16, #tpu.memory_space<vmem>>, vector<128x32xbf16>
    %c1 = arith.constant 1 : index
    %c0_15 = arith.constant 0 : index
    %c0_16 = arith.constant 0 : index
    %20 = vector.load %arg2[%c1, %c0_15, %c0_16] : memref<9x32x16xbf16, #tpu.memory_space<vmem>>, vector<1x32x16xbf16>
    %21 = vector.shape_cast %20 : vector<1x32x16xbf16> to vector<32x16xbf16>
    %cst_17 = arith.constant dense<0.000000e+00> : vector<128x16xf32>
    %22 = tpu.matmul %19, %21, %cst_17 {dimension_numbers = #tpu.dot_dimension_numbers<[1], [0], [0], [1], [0, 0, 1, 1], [], []>} : vector<128x32xbf16>, vector<32x16xbf16>, vector<128x16xf32> -> vector<128x16xf32>
    %23 = arith.addf %18, %22 : vector<128x16xf32>
    %c17 = arith.constant 17 : index
    %c0_18 = arith.constant 0 : index
    %24 = vector.load %arg6[%c17, %c0_18] : memref<192x32xbf16, #tpu.memory_space<vmem>>, vector<128x32xbf16>
    %c2 = arith.constant 2 : index
    %c0_19 = arith.constant 0 : index
    %c0_20 = arith.constant 0 : index
    %25 = vector.load %arg2[%c2, %c0_19, %c0_20] : memref<9x32x16xbf16, #tpu.memory_space<vmem>>, vector<1x32x16xbf16>
    %26 = vector.shape_cast %25 : vector<1x32x16xbf16> to vector<32x16xbf16>
    %cst_21 = arith.constant dense<0.000000e+00> : vector<128x16xf32>
    %27 = tpu.matmul %24, %26, %cst_21 {dimension_numbers = #tpu.dot_dimension_numbers<[1], [0], [0], [1], [0, 0, 1, 1], [], []>} : vector<128x32xbf16>, vector<32x16xbf16>, vector<128x16xf32> -> vector<128x16xf32>
    %28 = arith.addf %23, %27 : vector<128x16xf32>
    %c31 = arith.constant 31 : index
    %c0_22 = arith.constant 0 : index
    %29 = vector.load %arg6[%c31, %c0_22] : memref<192x32xbf16, #tpu.memory_space<vmem>>, vector<128x32xbf16>
    %c3 = arith.constant 3 : index
    %c0_23 = arith.constant 0 : index
    %c0_24 = arith.constant 0 : index
    %30 = vector.load %arg2[%c3, %c0_23, %c0_24] : memref<9x32x16xbf16, #tpu.memory_space<vmem>>, vector<1x32x16xbf16>
    %31 = vector.shape_cast %30 : vector<1x32x16xbf16> to vector<32x16xbf16>
    %cst_25 = arith.constant dense<0.000000e+00> : vector<128x16xf32>
    %32 = tpu.matmul %29, %31, %cst_25 {dimension_numbers = #tpu.dot_dimension_numbers<[1], [0], [0], [1], [0, 0, 1, 1], [], []>} : vector<128x32xbf16>, vector<32x16xbf16>, vector<128x16xf32> -> vector<128x16xf32>
    %33 = arith.addf %28, %32 : vector<128x16xf32>
    %c32_26 = arith.constant 32 : index
    %c0_27 = arith.constant 0 : index
    %34 = vector.load %arg6[%c32_26, %c0_27] : memref<192x32xbf16, #tpu.memory_space<vmem>>, vector<128x32xbf16>
    %c4 = arith.constant 4 : index
    %c0_28 = arith.constant 0 : index
    %c0_29 = arith.constant 0 : index
    %35 = vector.load %arg2[%c4, %c0_28, %c0_29] : memref<9x32x16xbf16, #tpu.memory_space<vmem>>, vector<1x32x16xbf16>
    %36 = vector.shape_cast %35 : vector<1x32x16xbf16> to vector<32x16xbf16>
    %cst_30 = arith.constant dense<0.000000e+00> : vector<128x16xf32>
    %37 = tpu.matmul %34, %36, %cst_30 {dimension_numbers = #tpu.dot_dimension_numbers<[1], [0], [0], [1], [0, 0, 1, 1], [], []>} : vector<128x32xbf16>, vector<32x16xbf16>, vector<128x16xf32> -> vector<128x16xf32>
    %38 = arith.addf %33, %37 : vector<128x16xf32>
    %c33 = arith.constant 33 : index
    %c0_31 = arith.constant 0 : index
    %39 = vector.load %arg6[%c33, %c0_31] : memref<192x32xbf16, #tpu.memory_space<vmem>>, vector<128x32xbf16>
    %c5 = arith.constant 5 : index
    %c0_32 = arith.constant 0 : index
    %c0_33 = arith.constant 0 : index
    %40 = vector.load %arg2[%c5, %c0_32, %c0_33] : memref<9x32x16xbf16, #tpu.memory_space<vmem>>, vector<1x32x16xbf16>
    %41 = vector.shape_cast %40 : vector<1x32x16xbf16> to vector<32x16xbf16>
    %cst_34 = arith.constant dense<0.000000e+00> : vector<128x16xf32>
    %42 = tpu.matmul %39, %41, %cst_34 {dimension_numbers = #tpu.dot_dimension_numbers<[1], [0], [0], [1], [0, 0, 1, 1], [], []>} : vector<128x32xbf16>, vector<32x16xbf16>, vector<128x16xf32> -> vector<128x16xf32>
    %43 = arith.addf %38, %42 : vector<128x16xf32>
    %c47 = arith.constant 47 : index
    %c0_35 = arith.constant 0 : index
    %44 = vector.load %arg6[%c47, %c0_35] : memref<192x32xbf16, #tpu.memory_space<vmem>>, vector<128x32xbf16>
    %c6 = arith.constant 6 : index
    %c0_36 = arith.constant 0 : index
    %c0_37 = arith.constant 0 : index
    %45 = vector.load %arg2[%c6, %c0_36, %c0_37] : memref<9x32x16xbf16, #tpu.memory_space<vmem>>, vector<1x32x16xbf16>
    %46 = vector.shape_cast %45 : vector<1x32x16xbf16> to vector<32x16xbf16>
    %cst_38 = arith.constant dense<0.000000e+00> : vector<128x16xf32>
    %47 = tpu.matmul %44, %46, %cst_38 {dimension_numbers = #tpu.dot_dimension_numbers<[1], [0], [0], [1], [0, 0, 1, 1], [], []>} : vector<128x32xbf16>, vector<32x16xbf16>, vector<128x16xf32> -> vector<128x16xf32>
    %48 = arith.addf %43, %47 : vector<128x16xf32>
    %c48 = arith.constant 48 : index
    %c0_39 = arith.constant 0 : index
    %49 = vector.load %arg6[%c48, %c0_39] : memref<192x32xbf16, #tpu.memory_space<vmem>>, vector<128x32xbf16>
    %c7 = arith.constant 7 : index
    %c0_40 = arith.constant 0 : index
    %c0_41 = arith.constant 0 : index
    %50 = vector.load %arg2[%c7, %c0_40, %c0_41] : memref<9x32x16xbf16, #tpu.memory_space<vmem>>, vector<1x32x16xbf16>
    %51 = vector.shape_cast %50 : vector<1x32x16xbf16> to vector<32x16xbf16>
    %cst_42 = arith.constant dense<0.000000e+00> : vector<128x16xf32>
    %52 = tpu.matmul %49, %51, %cst_42 {dimension_numbers = #tpu.dot_dimension_numbers<[1], [0], [0], [1], [0, 0, 1, 1], [], []>} : vector<128x32xbf16>, vector<32x16xbf16>, vector<128x16xf32> -> vector<128x16xf32>
    %53 = arith.addf %48, %52 : vector<128x16xf32>
    %c49 = arith.constant 49 : index
    %c0_43 = arith.constant 0 : index
    %54 = vector.load %arg6[%c49, %c0_43] : memref<192x32xbf16, #tpu.memory_space<vmem>>, vector<128x32xbf16>
    %c8 = arith.constant 8 : index
    %c0_44 = arith.constant 0 : index
    %c0_45 = arith.constant 0 : index
    %55 = vector.load %arg2[%c8, %c0_44, %c0_45] : memref<9x32x16xbf16, #tpu.memory_space<vmem>>, vector<1x32x16xbf16>
    %56 = vector.shape_cast %55 : vector<1x32x16xbf16> to vector<32x16xbf16>
    %cst_46 = arith.constant dense<0.000000e+00> : vector<128x16xf32>
    %57 = tpu.matmul %54, %56, %cst_46 {dimension_numbers = #tpu.dot_dimension_numbers<[1], [0], [0], [1], [0, 0, 1, 1], [], []>} : vector<128x32xbf16>, vector<32x16xbf16>, vector<128x16xf32> -> vector<128x16xf32>
    %58 = arith.addf %53, %57 : vector<128x16xf32>
    %59 = vector.shape_cast %58 : vector<128x16xf32> to vector<8x16x16xf32>
    %60 = vector.extract_strided_slice %59 {offsets = [0, 0, 0], sizes = [8, 8, 16], strides = [1, 1, 1]} : vector<8x16x16xf32> to vector<8x8x16xf32>
    %61 = vector.shape_cast %60 : vector<8x8x16xf32> to vector<64x16xf32>
    %cst_47 = arith.constant dense<0.000000e+00> : vector<16xf32>
    %62 = vector.multi_reduction <add>, %61, %cst_47 [0] : vector<64x16xf32> to vector<16xf32>
    %63 = vector.shape_cast %62 : vector<16xf32> to vector<1x16xf32>
    %cst_48 = arith.constant 1.562500e-02 : f32
    %64 = vector.broadcast %cst_48 : f32 to vector<1x16xf32>
    %65 = arith.mulf %63, %64 : vector<1x16xf32>
    %c0_49 = arith.constant 0 : index
    %c0_50 = arith.constant 0 : index
    %66 = vector.load %arg3[%c0_49, %c0_50] : memref<16x1xf32, #tpu.memory_space<vmem>>, vector<16x1xf32>
    %cst_51 = arith.constant dense<0.000000e+00> : vector<1x1xf32>
    %67 = tpu.matmul %65, %66, %cst_51 {dimension_numbers = #tpu.dot_dimension_numbers<[1], [0], [0], [1], [0, 0, 1, 1], [], []>} : vector<1x16xf32>, vector<16x1xf32>, vector<1x1xf32> -> vector<1x1xf32>
    %cst_52 = arith.constant 0.000000e+00 : f32
    %68 = vector.broadcast %cst_52 : f32 to vector<1x1xf32>
    %69 = arith.maximumf %67, %68 : vector<1x1xf32>
    %c0_53 = arith.constant 0 : index
    %c0_54 = arith.constant 0 : index
    %70 = vector.load %arg4[%c0_53, %c0_54] : memref<1x16xf32, #tpu.memory_space<vmem>>, vector<1x16xf32>
    %cst_55 = arith.constant dense<0.000000e+00> : vector<1x16xf32>
    %71 = tpu.matmul %69, %70, %cst_55 {dimension_numbers = #tpu.dot_dimension_numbers<[1], [0], [0], [1], [0, 0, 1, 1], [], []>} : vector<1x1xf32>, vector<1x16xf32>, vector<1x16xf32> -> vector<1x16xf32>
    %72 = arith.negf %71 : vector<1x16xf32>
    %73 = math.exp %72 : vector<1x16xf32>
    %cst_56 = arith.constant 1.000000e+00 : f32
    %74 = vector.broadcast %cst_56 : f32 to vector<1x16xf32>
    %75 = arith.addf %74, %73 : vector<1x16xf32>
    %76 = arith.divf %74, %75 : vector<1x16xf32>
    %77 = vector.broadcast %76 : vector<1x16xf32> to vector<64x16xf32>
    %78 = arith.mulf %61, %77 : vector<64x16xf32>
    %79 = arith.truncf %78 : vector<64x16xf32> to vector<64x16xbf16>
    %c0_57 = arith.constant 0 : index
    %c0_58 = arith.constant 0 : index
    %c0_59 = arith.constant 0 : index
    %80 = vector.load %arg5[%c0_57, %c0_58, %c0_59] : memref<1x64x16xbf16, #tpu.memory_space<vmem>>, vector<1x64x16xbf16>
    %81 = vector.shape_cast %80 : vector<1x64x16xbf16> to vector<64x16xbf16>
    %82 = vector.shape_cast %79 : vector<64x16xbf16> to vector<1x64x16xbf16>
    tpu.vector_store %arg5[%c0_57, %c0_58, %c0_59], %82 {strides = array<i32>} : memref<1x64x16xbf16, #tpu.memory_space<vmem>>, vector<1x64x16xbf16>,
    return
  }
  func.func @transform_0(%arg0: i32) -> (i32, i32, i32) {
    %c0_i32 = arith.constant 0 : i32
    %c0_i32_0 = arith.constant 0 : i32
    %c0_i32_1 = arith.constant 0 : i32
    return %arg0, %c0_i32, %c0_i32_0 : i32, i32, i32
  }
  func.func @transform_1(%arg0: i32) -> (i32, i32, i32) {
    %c0_i32 = arith.constant 0 : i32
    %c0_i32_0 = arith.constant 0 : i32
    %c0_i32_1 = arith.constant 0 : i32
    %c0_i32_2 = arith.constant 0 : i32
    return %c0_i32, %c0_i32_0, %c0_i32_1 : i32, i32, i32
  }
  func.func @transform_2(%arg0: i32) -> (i32, i32) {
    %c0_i32 = arith.constant 0 : i32
    %c0_i32_0 = arith.constant 0 : i32
    %c0_i32_1 = arith.constant 0 : i32
    return %c0_i32, %c0_i32_0 : i32, i32
  }
  func.func @transform_3(%arg0: i32) -> (i32, i32) {
    %c0_i32 = arith.constant 0 : i32
    %c0_i32_0 = arith.constant 0 : i32
    %c0_i32_1 = arith.constant 0 : i32
    return %c0_i32, %c0_i32_0 : i32, i32
  }
  func.func @transform_4(%arg0: i32) -> (i32, i32, i32) {
    %c0_i32 = arith.constant 0 : i32
    %c0_i32_0 = arith.constant 0 : i32
    %c0_i32_1 = arith.constant 0 : i32
    return %arg0, %c0_i32, %c0_i32_0 : i32, i32, i32
  }
}

module attributes {stable_mosaic.version = 11 : i64} {
  func.func @_bn_relu_1x1_bn_relu_kernel(%arg0: i32, %arg1: memref<64x16xf32, #tpu.memory_space<vmem>>, %arg2: memref<1x16xf32, #tpu.memory_space<vmem>>, %arg3: memref<1x16xf32, #tpu.memory_space<vmem>>, %arg4: memref<64x16xbf16, #tpu.memory_space<vmem>>, %arg5: memref<1x16xf32, #tpu.memory_space<vmem>>, %arg6: memref<1x16xf32, #tpu.memory_space<vmem>>, %arg7: memref<32x32xbf16, #tpu.memory_space<vmem>>, %arg8: memref<1x32xf32, #tpu.memory_space<vmem>>, %arg9: memref<1x32xf32, #tpu.memory_space<vmem>>, %arg10: memref<64x32xbf16, #tpu.memory_space<vmem>>) attributes {dimension_semantics = [#tpu.dimension_semantics<parallel>], iteration_bounds = array<i64: 2>, scalar_prefetch = 0 : i64, scratch_operands = 0 : i64, tpu.core_type = #tpu.core_type<tc>, window_params = [{transform_indices = @transform_0, window_bounds = array<i64: 64, 16>}, {pipeline_mode = #tpu.pipeline_mode<synchronous>, transform_indices = @transform_1, window_bounds = array<i64: 1, 16>}, {pipeline_mode = #tpu.pipeline_mode<synchronous>, transform_indices = @transform_2, window_bounds = array<i64: 1, 16>}, {transform_indices = @transform_3, window_bounds = array<i64: 64, 16>}, {pipeline_mode = #tpu.pipeline_mode<synchronous>, transform_indices = @transform_4, window_bounds = array<i64: 1, 16>}, {pipeline_mode = #tpu.pipeline_mode<synchronous>, transform_indices = @transform_5, window_bounds = array<i64: 1, 16>}, {pipeline_mode = #tpu.pipeline_mode<synchronous>, transform_indices = @transform_6, window_bounds = array<i64: 32, 32>}, {pipeline_mode = #tpu.pipeline_mode<synchronous>, transform_indices = @transform_7, window_bounds = array<i64: 1, 32>}, {pipeline_mode = #tpu.pipeline_mode<synchronous>, transform_indices = @transform_8, window_bounds = array<i64: 1, 32>}, {transform_indices = @transform_9, window_bounds = array<i64: 64, 32>}]} {
    %c0 = arith.constant 0 : index
    %c0_0 = arith.constant 0 : index
    %0 = vector.load %arg1[%c0, %c0_0] : memref<64x16xf32, #tpu.memory_space<vmem>>, vector<64x16xf32>
    %c0_1 = arith.constant 0 : index
    %c0_2 = arith.constant 0 : index
    %1 = vector.load %arg2[%c0_1, %c0_2] : memref<1x16xf32, #tpu.memory_space<vmem>>, vector<1x16xf32>
    %2 = vector.broadcast %1 : vector<1x16xf32> to vector<64x16xf32>
    %3 = arith.mulf %0, %2 : vector<64x16xf32>
    %c0_3 = arith.constant 0 : index
    %c0_4 = arith.constant 0 : index
    %4 = vector.load %arg3[%c0_3, %c0_4] : memref<1x16xf32, #tpu.memory_space<vmem>>, vector<1x16xf32>
    %5 = vector.broadcast %4 : vector<1x16xf32> to vector<64x16xf32>
    %6 = arith.addf %3, %5 : vector<64x16xf32>
    %cst = arith.constant 0.000000e+00 : f32
    %7 = vector.broadcast %cst : f32 to vector<64x16xf32>
    %8 = arith.maximumf %6, %7 : vector<64x16xf32>
    %c0_5 = arith.constant 0 : index
    %c0_6 = arith.constant 0 : index
    %9 = vector.load %arg4[%c0_5, %c0_6] : memref<64x16xbf16, #tpu.memory_space<vmem>>, vector<64x16xbf16>
    %10 = arith.extf %9 : vector<64x16xbf16> to vector<64x16xf32>
    %c0_7 = arith.constant 0 : index
    %c0_8 = arith.constant 0 : index
    %11 = vector.load %arg5[%c0_7, %c0_8] : memref<1x16xf32, #tpu.memory_space<vmem>>, vector<1x16xf32>
    %12 = vector.broadcast %11 : vector<1x16xf32> to vector<64x16xf32>
    %13 = arith.mulf %10, %12 : vector<64x16xf32>
    %c0_9 = arith.constant 0 : index
    %c0_10 = arith.constant 0 : index
    %14 = vector.load %arg6[%c0_9, %c0_10] : memref<1x16xf32, #tpu.memory_space<vmem>>, vector<1x16xf32>
    %15 = vector.broadcast %14 : vector<1x16xf32> to vector<64x16xf32>
    %16 = arith.addf %13, %15 : vector<64x16xf32>
    %cst_11 = arith.constant 0.000000e+00 : f32
    %17 = vector.broadcast %cst_11 : f32 to vector<64x16xf32>
    %18 = arith.maximumf %16, %17 : vector<64x16xf32>
    %19 = tpu.concatenate %8, %18 in 1 : vector<64x16xf32>, vector<64x16xf32> -> vector<64x32xf32>
    %20 = arith.truncf %19 : vector<64x32xf32> to vector<64x32xbf16>
    %c0_12 = arith.constant 0 : index
    %c0_13 = arith.constant 0 : index
    %21 = vector.load %arg7[%c0_12, %c0_13] : memref<32x32xbf16, #tpu.memory_space<vmem>>, vector<32x32xbf16>
    %cst_14 = arith.constant dense<0.000000e+00> : vector<64x32xf32>
    %22 = tpu.matmul %20, %21, %cst_14 {dimension_numbers = #tpu.dot_dimension_numbers<[1], [0], [0], [1], [0, 0, 1, 1], [], []>} : vector<64x32xbf16>, vector<32x32xbf16>, vector<64x32xf32> -> vector<64x32xf32>
    %c0_15 = arith.constant 0 : index
    %c0_16 = arith.constant 0 : index
    %23 = vector.load %arg8[%c0_15, %c0_16] : memref<1x32xf32, #tpu.memory_space<vmem>>, vector<1x32xf32>
    %24 = vector.broadcast %23 : vector<1x32xf32> to vector<64x32xf32>
    %25 = arith.mulf %22, %24 : vector<64x32xf32>
    %c0_17 = arith.constant 0 : index
    %c0_18 = arith.constant 0 : index
    %26 = vector.load %arg9[%c0_17, %c0_18] : memref<1x32xf32, #tpu.memory_space<vmem>>, vector<1x32xf32>
    %27 = vector.broadcast %26 : vector<1x32xf32> to vector<64x32xf32>
    %28 = arith.addf %25, %27 : vector<64x32xf32>
    %cst_19 = arith.constant 0.000000e+00 : f32
    %29 = vector.broadcast %cst_19 : f32 to vector<64x32xf32>
    %30 = arith.maximumf %28, %29 : vector<64x32xf32>
    %31 = arith.truncf %30 : vector<64x32xf32> to vector<64x32xbf16>
    %c0_20 = arith.constant 0 : index
    %c0_21 = arith.constant 0 : index
    %32 = vector.load %arg10[%c0_20, %c0_21] : memref<64x32xbf16, #tpu.memory_space<vmem>>, vector<64x32xbf16>
    tpu.vector_store %arg10[%c0_20, %c0_21], %31 {strides = array<i32>} : memref<64x32xbf16, #tpu.memory_space<vmem>>, vector<64x32xbf16>,
    return
  }
  func.func @transform_0(%arg0: i32) -> (i32, i32) {
    %c0_i32 = arith.constant 0 : i32
    %c0_i32_0 = arith.constant 0 : i32
    return %arg0, %c0_i32 : i32, i32
  }
  func.func @transform_1(%arg0: i32) -> (i32, i32) {
    %c0_i32 = arith.constant 0 : i32
    %c0_i32_0 = arith.constant 0 : i32
    %c0_i32_1 = arith.constant 0 : i32
    return %c0_i32, %c0_i32_0 : i32, i32
  }
  func.func @transform_2(%arg0: i32) -> (i32, i32) {
    %c0_i32 = arith.constant 0 : i32
    %c0_i32_0 = arith.constant 0 : i32
    %c0_i32_1 = arith.constant 0 : i32
    return %c0_i32, %c0_i32_0 : i32, i32
  }
  func.func @transform_3(%arg0: i32) -> (i32, i32) {
    %c0_i32 = arith.constant 0 : i32
    %c0_i32_0 = arith.constant 0 : i32
    return %arg0, %c0_i32 : i32, i32
  }
  func.func @transform_4(%arg0: i32) -> (i32, i32) {
    %c0_i32 = arith.constant 0 : i32
    %c0_i32_0 = arith.constant 0 : i32
    %c0_i32_1 = arith.constant 0 : i32
    return %c0_i32, %c0_i32_0 : i32, i32
  }
  func.func @transform_5(%arg0: i32) -> (i32, i32) {
    %c0_i32 = arith.constant 0 : i32
    %c0_i32_0 = arith.constant 0 : i32
    %c0_i32_1 = arith.constant 0 : i32
    return %c0_i32, %c0_i32_0 : i32, i32
  }
  func.func @transform_6(%arg0: i32) -> (i32, i32) {
    %c0_i32 = arith.constant 0 : i32
    %c0_i32_0 = arith.constant 0 : i32
    %c0_i32_1 = arith.constant 0 : i32
    return %c0_i32, %c0_i32_0 : i32, i32
  }
  func.func @transform_7(%arg0: i32) -> (i32, i32) {
    %c0_i32 = arith.constant 0 : i32
    %c0_i32_0 = arith.constant 0 : i32
    %c0_i32_1 = arith.constant 0 : i32
    return %c0_i32, %c0_i32_0 : i32, i32
  }
  func.func @transform_8(%arg0: i32) -> (i32, i32) {
    %c0_i32 = arith.constant 0 : i32
    %c0_i32_0 = arith.constant 0 : i32
    %c0_i32_1 = arith.constant 0 : i32
    return %c0_i32, %c0_i32_0 : i32, i32
  }
  func.func @transform_9(%arg0: i32) -> (i32, i32) {
    %c0_i32 = arith.constant 0 : i32
    %c0_i32_0 = arith.constant 0 : i32
    return %arg0, %c0_i32 : i32, i32
  }
}

</mosaic_0001>

<bundles_post_ra>
// kernel: dense_block.4
= control target key start
LH: loop header
LB: loop body
LE: loop exit
PB: predicated region body
PF: predicated region fallthrough
CT: control target
= control target key end

     0   :  { %s632_s21 = smov 0   ;;  %s680_s0 = inlined_call_operand.vmem [shape: f32[128,16], index: 0, kind: input, shape index: {}]   ;;  %s681_s1 = inlined_call_operand.vmem [shape: f32[1,16], index: 1, kind: input, shape index: {}]   ;;  %s682_s2 = inlined_call_operand.vmem [shape: f32[1,16], index: 2, kind: input, shape index: {}]   ;;  %s683_s3 = inlined_call_operand.vmem [shape: bf16[16,32], index: 3, kind: input, shape index: {}]   ;;  %s684_s4 = inlined_call_operand.vmem [shape: f32[1,32], index: 4, kind: input, shape index: {}]   ;;  %s685_s5 = inlined_call_operand.vmem [shape: f32[1,32], index: 5, kind: input, shape index: {}]   ;;  %s686_s6 = inlined_call_operand.vmem [shape: bf16[128,32], index: 6, kind: output, shape index: {}]  }
   0x1 LB: > { %s527_s22 = sadd.s32 4294967295, %s595_s21   ;;  %p531_p0 = scmp.ge.s32.totalorder %s595_s21, 1  ;;  %s595_s21 = sphi %s632_s21, %s16_s21  }
   0x2   : > { %p213_p1 = scmp.lt.s32.totalorder %s595_s21, 3 }
   0x4   : > { %p214_p2 = pnand %p531_p0, %p213_p1 }
   0x5   : > { %v588_v0 = vld [vmem:[%s683_s3] sm:$0xff] (!%p214_p2)   ;;  %s532_s25 = sshll.u32 (!%p214_p2), %s527_s22, 3  ;;  %vm314_vm0 = vcmask (!%p214_p2), 130048   ;;  %vm462_vm1 = vcmask (!%p214_p2), 257024  }
   0x6   : > { %217 = sbr.rel (%p214_p2) target bundleno = 252 (0xfc), region = 44  ;;  %p244_p3 = scmp.lt.s32.totalorder (!%p214_p2), %s532_s25, 15  ;;  %568 = vmatprep.subr.bf16.mxu0 (!%p214_p2), %v588_v0  ;;  %578 = vmatprep.subr.bf16.mxu1 (!%p214_p2), %v588_v0  ;;  %v536_v1 = vld [vmem:[%s681_s1] ss:$0 sm:$0xff] (!%p214_p2) }
   0x7   : > { %569 = vmatpush3.bf16.msra.mxu0 (!%p214_p2), %v588_v0  ;;  %579 = vmatpush3.bf16.msra.mxu1 (!%p214_p2), %v588_v0  ;;  %v537_v2 = vld [vmem:[%s682_s2] ss:$0 sm:$0xff] (!%p214_p2) }
   0x8   : > { %v543_v39 = vld [vmem:[%s684_s4] ss:$0 sm:$0xff] (!%p214_p2) }
   0x9   : > { %v544_v41 = vld [vmem:[%s685_s5] ss:$0 sm:$0xff] (!%p214_p2) }
   0xd   : > { %s688_s25 = smov (!%p244_p3, %s532_s25), 15 }
   0xe   : > { %s533_s26 = sshll.u32 %s688_s25, 3  ;;  %s535_s14 = sshll.u32 %s688_s25, 2 }
   0xf   : > { %s247_s7 = scalar_lea.vmem %s680_s0, %s533_s26  ;;  %s253_s17 = scalar_lea.vmem %s686_s6, %s535_s14 }
  0x10   : > { %v256_v3 = vld [vmem:[%s247_s7] sm:$0xff]  ;;  %v257_v4 = vld [vmem:[%s247_s7 + $0x8] sm:$0xff]  ;;  %v258_v10 = vld [vmem:[%s247_s7 + $0x10] sm:$0xff] }
  0x11   : > { %v260_v5 = vld [vmem:[%s247_s7 + $0x20] sm:$0xff]  ;;  %v271_v6 = vmul.f32 %v536_v1, %v256_v3  ;;  %v272_v7 = vmul.f32 %v536_v1, %v257_v4  ;;  %v261_v8 = vld [vmem:[%s247_s7 + $0x28] sm:$0xff]  ;;  %v259_v11 = vld [vmem:[%s247_s7 + $0x18] sm:$0xff]  ;;  %v273_v13 = vmul.f32 %v536_v1, %v258_v10 }
  0x12   : > { %v275_v9 = vmul.f32 %v536_v1, %v260_v5  ;;  %v276_v12 = vmul.f32 %v536_v1, %v261_v8  ;;  %v274_v14 = vmul.f32 %v536_v1, %v259_v11  ;;  %v262_v15 = vld [vmem:[%s247_s7 + $0x30] sm:$0xff]  ;;  %v263_v16 = vld [vmem:[%s247_s7 + $0x38] sm:$0xff] }
  0x13   : > { %v286_v17 = vadd.f32 %v537_v2, %v271_v6  ;;  %v287_v18 = vadd.f32 %v537_v2, %v272_v7  ;;  %v277_v20 = vmul.f32 %v536_v1, %v262_v15  ;;  %v288_v22 = vadd.f32 %v537_v2, %v273_v13 }
  0x14   : > { %v290_v19 = vadd.f32 %v537_v2, %v275_v9  ;;  %v291_v21 = vadd.f32 %v537_v2, %v276_v12  ;;  %v289_v23 = vadd.f32 %v537_v2, %v274_v14  ;;  %v278_v24 = vmul.f32 %v536_v1, %v263_v16 }
  0x15   : > { %v294_v25 = vmax.f32 %v286_v17, 0.0  ;;  %v295_v26 = vmax.f32 %v287_v18, 0.0  ;;  %v292_v28 = vadd.f32 %v537_v2, %v277_v20  ;;  %v296_v30 = vmax.f32 %v288_v22, 0.0 }
  0x16   : > { %v298_v27 = vmax.f32 %v290_v19, 0.0  ;;  %v299_v29 = vmax.f32 %v291_v21, 0.0  ;;  %v297_v31 = vmax.f32 %v289_v23, 0.0  ;;  %v293_v32 = vadd.f32 %v537_v2, %v278_v24 }
  0x17   : > { %v302_v33 = vpack.c.bf16 %v295_v26, %v294_v25  ;;  %v300_v34 = vmax.f32 %v292_v28, 0.0 }
  0x18   : > { %v304_v35 = vpack.c.bf16 %v299_v29, %v298_v27  ;;  %v303_v36 = vpack.c.bf16 %v297_v31, %v296_v30  ;;  %v301_v37 = vmax.f32 %v293_v32, 0.0 }
  0x19   : > { %570 = vmatprep.mubr.msk.bf16.mxu0 %vm314_vm0, %v302_v33 }
  0x1a   : > { %574 = vmatprep.mubr.msk.bf16.mxu1 %vm314_vm0, %v304_v35  ;;  %571 = vmatmul.mubr.msk.bf16.vlgmr.msra.gmra.mrb[0].mxu0 %vm314_vm0, %v303_v36  ;;  %v305_v38 = vpack.c.bf16 %v301_v37, %v300_v34 }
  0x1c   : > { %575 = vmatmul.mubr.msk.bf16.vlgmr.msra.gmra.mrb[0].mxu1 %vm314_vm0, %v305_v38 }
  0xed   : > { %v572_v40 = vpop.f32.mrb[0].mxu0 }
  0xee   : > { %v401_v42 = vmul.f32 %v572_v40, %v543_v39  ;;  %v361_v43 = vpop.f32.mrb[1].mxu0 }
  0xef   : > { %v576_v44 = vpop.f32.mrb[0].mxu1  ;;  %v399_v45 = vmul.f32 %v543_v39, %v361_v43  ;;  %v573_v46 = vpop.f32.mrb[2].mxu0 }
  0xf0   : > { %v416_v47 = vadd.f32 %v544_v41, %v401_v42  ;;  %v405_v48 = vmul.f32 %v576_v44, %v543_v39  ;;  %v377_v49 = vpop.f32.mrb[1].mxu1  ;;  %v402_v50 = vmul.f32 %v573_v46, %v543_v39  ;;  %v364_v51 = vpop.f32.mrb[3].mxu0 }
  0xf1   : > { %v414_v52 = vadd.f32 %v544_v41, %v399_v45  ;;  %v403_v53 = vmul.f32 %v543_v39, %v377_v49  ;;  %v577_v54 = vpop.f32.mrb[2].mxu1  ;;  %v400_v55 = vmul.f32 %v543_v39, %v364_v51 }
  0xf2   : > { %v424_v56 = vmax.f32 %v416_v47, 0.0  ;;  %v420_v57 = vadd.f32 %v544_v41, %v405_v48  ;;  %v417_v58 = vadd.f32 %v544_v41, %v402_v50  ;;  %v406_v59 = vmul.f32 %v577_v54, %v543_v39  ;;  %v380_v60 = vpop.f32.mrb[3].mxu1 }
  0xf3   : > { %v422_v61 = vmax.f32 %v414_v52, 0.0  ;;  %v418_v62 = vadd.f32 %v544_v41, %v403_v53  ;;  %v415_v63 = vadd.f32 %v544_v41, %v400_v55  ;;  %v404_v0 = vmul.f32 %v543_v39, %v380_v60 }
  0xf4   : > { %v557_v1 = vpack.c.bf16 %v424_v56, %v424_v56  ;;  %v428_v2 = vmax.f32 %v420_v57, 0.0  ;;  %v425_v3 = vmax.f32 %v417_v58, 0.0  ;;  %v421_v4 = vadd.f32 %v544_v41, %v406_v59 }
  0xf5   : > { %v555_v5 = vpack.c.bf16 %v422_v61, %v422_v61  ;;  %v426_v6 = vmax.f32 %v418_v62, 0.0  ;;  %v423_v7 = vmax.f32 %v415_v63, 0.0  ;;  %v419_v8 = vadd.f32 %v544_v41, %v404_v0 }
  0xf6   : > { %465 = vst.msk [vmem:[%s253_s17 + $0x8] sm:$0xf] %vm462_vm1, %v557_v1  ;;  %v561_v9 = vpack.c.bf16 %v428_v2, %v428_v2  ;;  %v558_v10 = vpack.c.bf16 %v425_v3, %v425_v3  ;;  %v429_v11 = vmax.f32 %v421_v4, 0.0 }
  0xf7   : > { %463 = vst.msk [vmem:[%s253_s17] sm:$0xf] %vm462_vm1, %v555_v5  ;;  %v559_v12 = vpack.c.bf16 %v426_v6, %v426_v6  ;;  %v556_v13 = vpack.c.bf16 %v423_v7, %v423_v7  ;;  %v427_v14 = vmax.f32 %v419_v8, 0.0 }
  0xf8   : > { %469 = vst.msk [vmem:[%s253_s17 + $0x18] sm:$0xf] %vm462_vm1, %v561_v9  ;;  %466 = vst.msk [vmem:[%s253_s17 + $0xc] sm:$0xf] %vm462_vm1, %v558_v10  ;;  %v562_v15 = vpack.c.bf16 %v429_v11, %v429_v11 }
  0xf9   : > { %467 = vst.msk [vmem:[%s253_s17 + $0x10] sm:$0xf] %vm462_vm1, %v559_v12  ;;  %464 = vst.msk [vmem:[%s253_s17 + $0x4] sm:$0xf] %vm462_vm1, %v556_v13  ;;  %v560_v16 = vpack.c.bf16 %v427_v14, %v427_v14 }
  0xfa   : > { %470 = vst.msk [vmem:[%s253_s17 + $0x1c] sm:$0xf] %vm462_vm1, %v562_v15 }
  0xfb   : > { %468 = vst.msk [vmem:[%s253_s17 + $0x14] sm:$0xf] %vm462_vm1, %v560_v16 }
  0xfc PF: > { %s16_s21 = sadd.s32 1, %s595_s21  }
  0xfd   : > { %p13_p4 = scmp.ge.s32.totalorder %s16_s21, 4  }
  0xff   :  { %15 = sbr.rel (!%p13_p4) target bundleno = 1 (0x1), region = 74 }

// kernel: dense_block.6
= control target key start
LH: loop header
LB: loop body
LE: loop exit
PB: predicated region body
PF: predicated region fallthrough
CT: control target
= control target key end

     0   :  { %s917_s30 = smov 0   ;;  %s999_s0 = inlined_call_operand.vmem [shape: f32[128,16], index: 0, kind: input, shape index: {}]   ;;  %s1000_s1 = inlined_call_operand.vmem [shape: f32[1,16], index: 1, kind: input, shape index: {}]   ;;  %s1001_s2 = inlined_call_operand.vmem [shape: f32[1,16], index: 2, kind: input, shape index: {}]   ;;  %s1002_s3 = inlined_call_operand.vmem [shape: bf16[128,16], index: 3, kind: input, shape index: {}]   ;;  %s1003_s4 = inlined_call_operand.vmem [shape: f32[1,16], index: 4, kind: input, shape index: {}]   ;;  %s1004_s5 = inlined_call_operand.vmem [shape: f32[1,16], index: 5, kind: input, shape index: {}]   ;;  %s1005_s6 = inlined_call_operand.vmem [shape: bf16[32,32], index: 6, kind: input, shape index: {}]   ;;  %s1006_s7 = inlined_call_operand.vmem [shape: f32[1,32], index: 7, kind: input, shape index: {}]   ;;  %s1007_s8 = inlined_call_operand.vmem [shape: f32[1,32], index: 8, kind: input, shape index: {}]   ;;  %s1008_s9 = inlined_call_operand.vmem [shape: bf16[128,32], index: 9, kind: output, shape index: {}]  }
   0x1 LB: > { %s745_s10 = sadd.s32 4294967295, %s864_s30   ;;  %p749_p0 = scmp.ge.s32.totalorder %s864_s30, 1  ;;  %s864_s30 = sphi %s917_s30, %s19_s30  }
   0x2   : > { %p299_p1 = scmp.lt.s32.totalorder %s864_s30, 3 }
   0x4   : > { %p300_p2 = pnand %p749_p0, %p299_p1 }
   0x5   : > { %s750_s11 = sshll.u32 (!%p300_p2), %s745_s10, 3  ;;  %v856_v0 = vld [vmem:[%s1005_s6] sm:$0xff] (!%p300_p2)   ;;  %v857_v1 = vld [vmem:[%s1005_s6 + $0x8] sm:$0xff] (!%p300_p2)   ;;  %s866_s24 = smov (!%p300_p2), 16   ;;  %vm491_vm0 = vcmask (!%p300_p2), 130048   ;;  %vm520_vm1 = vcmask (!%p300_p2), 261120  }
   0x6   : > { %303 = sbr.rel (%p300_p2) target bundleno = 376 (0x178), region = 56  ;;  %p341_p3 = scmp.lt.s32.totalorder (!%p300_p2), %s750_s11, 15  ;;  %811 = vmatprep.subr.bf16.mxu0 (!%p300_p2), %v856_v0  ;;  %823 = vmatprep.subr.bf16.mxu1 (!%p300_p2), %v856_v0  ;;  %v758_v2 = vld [vmem:[%s1003_s4] ss:$0 sm:$0xff] (!%p300_p2)  ;;  %vm668_vm2 = vcmask (!%p300_p2), 257024  }
   0x7   : > { %812 = vmatpush3.bf16.msra.mxu0 (!%p300_p2), %v856_v0  ;;  %825 = vmatpush3.bf16.msra.mxu1 (!%p300_p2), %v856_v0  ;;  %v759_v11 = vld [vmem:[%s1004_s5] ss:$0 sm:$0xff] (!%p300_p2) }
   0x8   : > { %813 = vmatprep.subr.bf16.mxu0 (!%p300_p2), %v857_v1  ;;  %824 = vmatprep.subr.bf16.mxu1 (!%p300_p2), %v857_v1  ;;  %v756_v44 = vld [vmem:[%s1000_s1] ss:$0 sm:$0xff] (!%p300_p2) }
   0x9   : > { %v757_v57 = vld [vmem:[%s1001_s2] ss:$0 sm:$0xff] (!%p300_p2) }
   0xb   : > { %814 = vmatpush3.bf16.msra.mxu0 (!%p300_p2), %v857_v1  ;;  %826 = vmatpush3.bf16.msra.mxu1 (!%p300_p2), %v857_v1 }
   0xd   : > { %s1010_s11 = smov (!%p341_p3, %s750_s11), 15 }
   0xe   : > { %s753_s14 = sshll.u32 %s1010_s11, 2  ;;  %s751_s25 = sshll.u32 %s1010_s11, 3 }
   0xf   : > { %s350_s19 = scalar_lea.vmem %s1002_s3, %s753_s14  ;;  %s344_s28 = scalar_lea.vmem %s999_s0, %s751_s25 }
  0x10   : > { %v787_v3 = vld [vmem:[%s350_s19] sm:$0xff]   ;;  %v802_v4 = vld [vmem:[%s350_s19 + $0x8] sm:$0xff]   ;;  %v803_v5 = vld [vmem:[%s350_s19 + $0x10] sm:$0xff]   ;;  %s978_s21 = scalar_lea.vmem %s1008_s9, %s753_s14 }
  0x11   : > { %v788_v6 = vunpack.c.l.bf16 %v787_v3  ;;  %v789_v7 = vunpack.c.h.bf16 %v787_v3  ;;  %v792_v8 = vunpack.c.l.bf16 %v802_v4  ;;  %v793_v9 = vunpack.c.h.bf16 %v802_v4  ;;  %v804_v10 = vld [vmem:[%s350_s19 + $0x18] sm:$0xff]   ;;  %v361_v45 = vld [vmem:[%s344_s28 + $0x10] sm:$0xff]  ;;  %v359_v47 = vld [vmem:[%s344_s28] sm:$0xff] }
  0x12   : > { %v796_v12 = vunpack.c.l.bf16 %v803_v5  ;;  %v797_v13 = vunpack.c.h.bf16 %v803_v5  ;;  %v800_v14 = vunpack.c.l.bf16 %v804_v10  ;;  %v801_v15 = vunpack.c.h.bf16 %v804_v10  ;;  %v362_v46 = vld [vmem:[%s344_s28 + $0x18] sm:$0xff]  ;;  %v360_v48 = vld [vmem:[%s344_s28 + $0x8] sm:$0xff]  ;;  %v365_v49 = vld [vmem:[%s344_s28 + $0x30] sm:$0xff] }
  0x13   : > { %v428_v16 = vmul.f32 %v788_v6, %v758_v2  ;;  %v429_v17 = vmul.f32 %v789_v7, %v758_v2  ;;  %v430_v18 = vmul.f32 %v792_v8, %v758_v2  ;;  %v431_v19 = vmul.f32 %v793_v9, %v758_v2  ;;  %v366_v52 = vld [vmem:[%s344_s28 + $0x38] sm:$0xff]  ;;  %v363_v55 = vld [vmem:[%s344_s28 + $0x20] sm:$0xff]  ;;  %v364_v56 = vld [vmem:[%s344_s28 + $0x28] sm:$0xff] }
  0x14   : > { %v432_v20 = vmul.f32 %v796_v12, %v758_v2  ;;  %v433_v21 = vmul.f32 %v797_v13, %v758_v2  ;;  %v434_v22 = vmul.f32 %v800_v14, %v758_v2  ;;  %v435_v23 = vmul.f32 %v801_v15, %v758_v2 }
  0x15   : > { %v443_v24 = vadd.f32 %v759_v11, %v428_v16  ;;  %v444_v25 = vadd.f32 %v759_v11, %v429_v17  ;;  %v445_v26 = vadd.f32 %v759_v11, %v430_v18  ;;  %v446_v27 = vadd.f32 %v759_v11, %v431_v19 }
  0x16   : > { %v447_v28 = vadd.f32 %v759_v11, %v432_v20  ;;  %v448_v29 = vadd.f32 %v759_v11, %v433_v21  ;;  %v449_v30 = vadd.f32 %v759_v11, %v434_v22  ;;  %v450_v31 = vadd.f32 %v759_v11, %v435_v23 }
  0x17   : > { %v451_v32 = vmax.f32 %v443_v24, 0.0  ;;  %v452_v33 = vmax.f32 %v444_v25, 0.0  ;;  %v453_v34 = vmax.f32 %v445_v26, 0.0  ;;  %v454_v35 = vmax.f32 %v446_v27, 0.0 }
  0x18   : > { %v455_v36 = vmax.f32 %v447_v28, 0.0  ;;  %v456_v37 = vmax.f32 %v448_v29, 0.0  ;;  %v457_v38 = vmax.f32 %v449_v30, 0.0  ;;  %v458_v39 = vmax.f32 %v450_v31, 0.0 }
  0x19   : > { %v836_v40 = vpack.i.bf16 %v452_v33, %v451_v32  ;;  %v846_v41 = vpack.i.bf16 %v454_v35, %v453_v34  ;;  %v376_v50 = vmul.f32 %v756_v44, %v361_v45  ;;  %v377_v51 = vmul.f32 %v756_v44, %v362_v46 }
  0x1a   : > { %v841_v42 = vpack.i.bf16 %v456_v37, %v455_v36  ;;  %v851_v43 = vpack.i.bf16 %v458_v39, %v457_v38  ;;  %v374_v53 = vmul.f32 %v756_v44, %v359_v47  ;;  %v375_v54 = vmul.f32 %v756_v44, %v360_v48  ;;  %v766_v38 = vld [vmem:[%s1006_s7] ss:$0 sm:$0xff] }
  0x1b   : > { %837 = vrot.lane.b32.xlu0 %v836_v40, %s866_s24  ;;  %847 = vrot.lane.b32.xlu1 %v846_v41, %s866_s24  ;;  %v380_v58 = vmul.f32 %v756_v44, %v365_v49  ;;  %v381_v59 = vmul.f32 %v756_v44, %v366_v52  ;;  %v378_v60 = vmul.f32 %v756_v44, %v363_v55  ;;  %v767_v40 = vld [vmem:[%s1007_s8] ss:$0 sm:$0xff] }
  0x1c   : > { %v379_v61 = vmul.f32 %v756_v44, %v364_v56  ;;  %v391_v62 = vadd.f32 %v757_v57, %v376_v50  ;;  %v392_v63 = vadd.f32 %v757_v57, %v377_v51  ;;  %v389_v0 = vadd.f32 %v757_v57, %v374_v53 }
  0x1d   : > { %v390_v1 = vadd.f32 %v757_v57, %v375_v54  ;;  %v395_v2 = vadd.f32 %v757_v57, %v380_v58  ;;  %v396_v3 = vadd.f32 %v757_v57, %v381_v59  ;;  %v393_v4 = vadd.f32 %v757_v57, %v378_v60 }
  0x1e   : > { %v394_v5 = vadd.f32 %v757_v57, %v379_v61  ;;  %v399_v6 = vmax.f32 %v391_v62, 0.0  ;;  %v400_v7 = vmax.f32 %v392_v63, 0.0  ;;  %v397_v8 = vmax.f32 %v389_v0, 0.0 }
  0x1f   : > { %842 = vrot.lane.b32.xlu0 %v841_v42, %s866_s24  ;;  %852 = vrot.lane.b32.xlu1 %v851_v43, %s866_s24  ;;  %v398_v9 = vmax.f32 %v390_v1, 0.0  ;;  %v403_v16 = vmax.f32 %v395_v2, 0.0  ;;  %v404_v17 = vmax.f32 %v396_v3, 0.0  ;;  %v401_v18 = vmax.f32 %v393_v4, 0.0 }
  0x20   : > { %v402_v19 = vmax.f32 %v394_v5, 0.0 }
  0x8d   : > { %v838_v10 = vpop.permute.xlu0 %837  ;;  %v848_v11 = vpop.permute.xlu1 %847 }
  0x8e   : > { %v840_v12 = vunpack.i.h.bf16 %v838_v10  ;;  %v839_v13 = vunpack.i.l.bf16 %v838_v10  ;;  %v850_v14 = vunpack.i.h.bf16 %v848_v11  ;;  %v849_v15 = vunpack.i.l.bf16 %v848_v11 }
  0x90   : > { %v494_v20 = vsel %vm491_vm0, %v399_v6, %v849_v15  ;;  %v495_v21 = vsel %vm491_vm0, %v400_v7, %v850_v14  ;;  %v492_v22 = vsel %vm491_vm0, %v397_v8, %v839_v13  ;;  %v493_v23 = vsel %vm491_vm0, %v398_v9, %v840_v12 }
  0x91   : > { %v501_v24 = vpack.c.bf16 %v495_v21, %v494_v20  ;;  %v843_v25 = vpop.permute.xlu0 %842  ;;  %v853_v26 = vpop.permute.xlu1 %852  ;;  %v500_v27 = vpack.c.bf16 %v493_v23, %v492_v22 }
  0x92   : > { %v845_v28 = vunpack.i.h.bf16 %v843_v25  ;;  %v844_v29 = vunpack.i.l.bf16 %v843_v25  ;;  %v855_v30 = vunpack.i.h.bf16 %v853_v26  ;;  %v854_v31 = vunpack.i.l.bf16 %v853_v26 }
  0x93   : > { %815 = vmatprep.mubr.msk.bf16.mxu0 %vm520_vm1, %v500_v27 }
  0x94   : > { %v498_v32 = vsel %vm491_vm0, %v403_v16, %v854_v31  ;;  %v499_v33 = vsel %vm491_vm0, %v404_v17, %v855_v30  ;;  %816 = vmatmul.mubr.msk.bf16.vlgmr.msra.gmra.mrb[0].mxu0 %vm520_vm1, %v501_v24  ;;  %v496_v34 = vsel %vm491_vm0, %v401_v18, %v844_v29  ;;  %v497_v35 = vsel %vm491_vm0, %v402_v19, %v845_v28 }
  0x95   : > { %v503_v36 = vpack.c.bf16 %v499_v33, %v498_v32  ;;  %v502_v37 = vpack.c.bf16 %v497_v35, %v496_v34 }
  0x97   : > { %819 = vmatprep.mubr.msk.bf16.mxu1 %vm520_vm1, %v502_v37 }
  0x98   : > { %820 = vmatmul.mubr.msk.bf16.vlgmr.msra.gmra.mrb[0].mxu1 %vm520_vm1, %v503_v36 }
 0x167   : > { %v817_v39 = vpop.f32.mrb[0].mxu0 }
 0x168   : > { %v607_v41 = vmul.f32 %v817_v39, %v766_v38  ;;  %v567_v42 = vpop.f32.mrb[1].mxu0 }
 0x169   : > { %v605_v43 = vmul.f32 %v766_v38, %v567_v42  ;;  %v818_v44 = vpop.f32.mrb[2].mxu0 }
 0x16a   : > { %v622_v45 = vadd.f32 %v767_v40, %v607_v41  ;;  %v608_v46 = vmul.f32 %v818_v44, %v766_v38  ;;  %v570_v47 = vpop.f32.mrb[3].mxu0 }
 0x16b   : > { %v620_v48 = vadd.f32 %v767_v40, %v605_v43  ;;  %v606_v49 = vmul.f32 %v766_v38, %v570_v47  ;;  %v821_v50 = vpop.f32.mrb[0].mxu1 }
 0x16c   : > { %v630_v51 = vmax.f32 %v622_v45, 0.0  ;;  %v623_v52 = vadd.f32 %v767_v40, %v608_v46  ;;  %v611_v53 = vmul.f32 %v821_v50, %v766_v38  ;;  %v583_v54 = vpop.f32.mrb[1].mxu1 }
 0x16d   : > { %v628_v55 = vmax.f32 %v620_v48, 0.0  ;;  %v621_v56 = vadd.f32 %v767_v40, %v606_v49  ;;  %v609_v57 = vmul.f32 %v766_v38, %v583_v54  ;;  %v822_v58 = vpop.f32.mrb[2].mxu1 }
 0x16e   : > { %v780_v59 = vpack.c.bf16 %v630_v51, %v630_v51  ;;  %v631_v60 = vmax.f32 %v623_v52, 0.0  ;;  %v626_v61 = vadd.f32 %v767_v40, %v611_v53  ;;  %v612_v62 = vmul.f32 %v822_v58, %v766_v38  ;;  %v586_v63 = vpop.f32.mrb[3].mxu1 }
 0x16f   : > { %v778_v0 = vpack.c.bf16 %v628_v55, %v628_v55  ;;  %v629_v1 = vmax.f32 %v621_v56, 0.0  ;;  %v624_v2 = vadd.f32 %v767_v40, %v609_v57  ;;  %v610_v3 = vmul.f32 %v766_v38, %v586_v63 }
 0x170   : > { %671 = vst.msk [vmem:[%s978_s21 + $0x8] sm:$0xf] %vm668_vm2, %v780_v59  ;;  %v781_v4 = vpack.c.bf16 %v631_v60, %v631_v60  ;;  %v634_v5 = vmax.f32 %v626_v61, 0.0  ;;  %v627_v6 = vadd.f32 %v767_v40, %v612_v62 }
 0x171   : > { %669 = vst.msk [vmem:[%s978_s21] sm:$0xf] %vm668_vm2, %v778_v0  ;;  %v779_v7 = vpack.c.bf16 %v629_v1, %v629_v1  ;;  %v632_v8 = vmax.f32 %v624_v2, 0.0  ;;  %v625_v9 = vadd.f32 %v767_v40, %v610_v3 }
 0x172   : > { %672 = vst.msk [vmem:[%s978_s21 + $0xc] sm:$0xf] %vm668_vm2, %v781_v4  ;;  %v784_v10 = vpack.c.bf16 %v634_v5, %v634_v5  ;;  %v635_v11 = vmax.f32 %v627_v6, 0.0 }
 0x173   : > { %670 = vst.msk [vmem:[%s978_s21 + $0x4] sm:$0xf] %vm668_vm2, %v779_v7  ;;  %v782_v12 = vpack.c.bf16 %v632_v8, %v632_v8  ;;  %v633_v13 = vmax.f32 %v625_v9, 0.0 }
 0x174   : > { %675 = vst.msk [vmem:[%s978_s21 + $0x18] sm:$0xf] %vm668_vm2, %v784_v10  ;;  %v785_v14 = vpack.c.bf16 %v635_v11, %v635_v11 }
 0x175   : > { %673 = vst.msk [vmem:[%s978_s21 + $0x10] sm:$0xf] %vm668_vm2, %v782_v12  ;;  %v783_v15 = vpack.c.bf16 %v633_v13, %v633_v13 }
 0x176   : > { %676 = vst.msk [vmem:[%s978_s21 + $0x1c] sm:$0xf] %vm668_vm2, %v785_v14 }
 0x177   : > { %674 = vst.msk [vmem:[%s978_s21 + $0x14] sm:$0xf] %vm668_vm2, %v783_v15 }
 0x178 PF: > { %s19_s30 = sadd.s32 1, %s864_s30  }
 0x179   : > { %p16_p4 = scmp.ge.s32.totalorder %s19_s30, 4  }
 0x17b   :  { %18 = sbr.rel (!%p16_p4) target bundleno = 1 (0x1), region = 89 }

// kernel: dense_block.5
= control target key start
LH: loop header
LB: loop body
LE: loop exit
PB: predicated region body
PF: predicated region fallthrough
CT: control target
= control target key end

     0   :  { %s2768_s15 = smov 0   ;;  %s3198_s0 = inlined_call_operand.vmem [shape: bf16[2,64,32], index: 0, kind: input, shape index: {}]   ;;  %s3199_s1 = inlined_call_operand.vmem [shape: bf16[9,32,16], index: 1, kind: input, shape index: {}]   ;;  %s3200_s2 = inlined_call_operand.vmem [shape: f32[16,1], index: 2, kind: input, shape index: {}]   ;;  %s3201_s3 = inlined_call_operand.vmem [shape: f32[1,16], index: 3, kind: input, shape index: {}]   ;;  %s3202_s4 = inlined_call_operand.vmem [shape: bf16[2,64,16], index: 4, kind: output, shape index: {}]  }
   0x1 LB: > { %s2109_s16 = sadd.s32 4294967295, %s2737_s15   ;;  %p2113_p0 = scmp.ge.s32.totalorder %s2737_s15, 1  ;;  %s2737_s15 = sphi %s2768_s15, %s14_s15  }
   0x2   : > { %p162_p1 = scmp.lt.s32.totalorder %s2737_s15, 3 }
   0x4   : > { %p163_p2 = pnand %p2113_p0, %p162_p1 }
   0x5   : > { %v2709_v0 = vld [vmem:[%s3199_s1 + $0x10] sm:$0xff] (!%p163_p2)   ;;  %vm199_vm0 = vcmask (!%p163_p2), 261120   ;;  %v2782_v1 = vld [vmem:[%s3199_s1 + $0x40] sm:$0xff] (!%p163_p2)   ;;  %v2711_v2 = vld [vmem:[%s3199_s1 + $0x18] sm:$0xff] (!%p163_p2)   ;;  %v2739_v3 = vmov (!%p163_p2), 0   ;;  %p188_p3 = scmp.lt.s32.totalorder (!%p163_p2), %s2109_s16, 1 }
   0x6   : > { %166 = sbr.rel (%p163_p2) target bundleno = 870 (0x366), region = 36  ;;  %2378 = vmatprep.subr.bf16.mxu1 (!%p163_p2), %v2709_v0  ;;  %201 = vst.msk [vmem:[#allocation2 + $0x8] sm:$0xff] (!%p163_p2), %vm199_vm0, %v2739_v3  ;;  %200 = vst.msk [vmem:[#allocation2] sm:$0xff] (!%p163_p2), %vm199_vm0, %v2739_v3  ;;  %2458 = vmatprep.subr.bf16.mxu0 (!%p163_p2), %v2782_v1  ;;  %v2795_v4 = vld [vmem:[%s3199_s1 + $0x48] sm:$0xff] (!%p163_p2)   ;;  %v2713_v5 = vld [vmem:[%s3199_s1 + $0x50] sm:$0xff] (!%p163_p2)   ;;  %v2740_v18 = vmov (!%p163_p2), 0.0  }
   0x7   : > { %202 = vst.msk [vmem:[#allocation2 + $0x50] sm:$0xff] (!%p163_p2), %vm199_vm0, %v2739_v3  ;;  %203 = vst.msk [vmem:[#allocation2 + $0x58] sm:$0xff] (!%p163_p2), %vm199_vm0, %v2739_v3  ;;  %2379 = vmatpush3.bf16.msra.mxu1 (!%p163_p2), %v2709_v0  ;;  %2459 = vmatpush3.bf16.msra.mxu0 (!%p163_p2), %v2782_v1  ;;  %v2714_v6 = vld [vmem:[%s3199_s1] sm:$0xff] (!%p163_p2)   ;;  %v2715_v29 = vld [vmem:[%s3199_s1 + $0x58] sm:$0xff] (!%p163_p2)   ;;  %vm379_vm1 = vsmask.f32 (!%p163_p2), 256 }
   0x8   : > { %2380 = vmatprep.subr.bf16.mxu1 (!%p163_p2), %v2711_v2  ;;  %2460 = vmatprep.subr.bf16.mxu0 (!%p163_p2), %v2795_v4  ;;  %v2717_v33 = vld [vmem:[%s3199_s1 + $0x8] sm:$0xff] (!%p163_p2)   ;;  %v2856_v35 = vld [vmem:[%s3199_s1 + $0x60] sm:$0xff] (!%p163_p2)   ;;  %vm579_vm2 = vsmask.f32 (!%p163_p2), 7424  ;;  %vm2742_vm3 = vmmov (!%p163_p2), 0   ;;  %vm1817_vm4 = vcmask (!%p163_p2), 130048  }
   0x9   : > { %v2861_v38 = vld [vmem:[%s3199_s1 + $0x20] sm:$0xff] (!%p163_p2)   ;;  %vm1921_vm5 = vcmask (!%p163_p2), 1040384   ;;  %vm1917_vm6 = vcmask (!%p163_p2), 7168   ;;  %vm2045_vm7 = vcmask (!%p163_p2), 125952  }
   0xb   : > { %2381 = vmatpush3.bf16.msra.mxu1 (!%p163_p2), %v2711_v2  ;;  %2461 = vmatpush3.bf16.msra.mxu0 (!%p163_p2), %v2795_v4 }
   0xc   : > { %2398 = vmatprep.subr.bf16.mxu1 (!%p163_p2), %v2714_v6  ;;  %2478 = vmatprep.subr.bf16.mxu0 (!%p163_p2), %v2713_v5 }
   0xd   : > { %s3204_s16 = smov (!%p188_p3, %s2109_s16), 1  ;;  %v2814_v10 = vld [vmem:[#allocation2 + $0x8] sm:$0xff]  ;;  %v236_v36 = vld [vmem:[#allocation2] sm:$0x80] }
   0xe   : > { %s2254_s29 = sshll.u32 %s3204_s16, 5  ;;  %2382 = vmatprep.mubr.msk.bf16.mxu1 %vm199_vm0, %v2814_v10  ;;  %v384_v34 = vshrl.u32 %v2814_v10, 16  ;;  %v387_v40 = vshll.u32 %v2814_v10, 16  ;;  %v381_v42 = vshrl.u32 %v236_v36, 16  ;;  %v2889_v51 = vld [vmem:[#allocation2 + $0x50] sm:$0xff]  ;;  %v2724_v10 = vld [vmem:[%s3199_s1 + $0x80] sm:$0xff]  }
   0xf   : > { %s192_s6 = scalar_lea.vmem %s3198_s0, %s2254_s29  ;;  %v1332_v60 = vshrl.u32 %v2889_v51, 16  ;;  %v1335_v0 = vshll.u32 %v2889_v51, 16  ;;  %s197_s18 = scalar_lea.vmem %s3202_s4, %s2254_s29 }
  0x10   : > { %v2265_v7 = vld [vmem:[%s192_s6] sm:$0xff]   ;;  %v2280_v8 = vld [vmem:[%s192_s6 + $0x8] sm:$0xff]   ;;  %v2281_v9 = vld [vmem:[%s192_s6 + $0x10] sm:$0xff]   ;;  %v2865_v39 = vrot.slane %v384_v34, 7  ;;  %v383_v48 = vrot.slane %v381_v42, 7 }
  0x11   : > { %v2266_v11 = vunpack.c.l.bf16 %v2265_v7  ;;  %v2267_v12 = vunpack.c.h.bf16 %v2265_v7  ;;  %v2270_v13 = vunpack.c.l.bf16 %v2280_v8  ;;  %v2271_v14 = vunpack.c.h.bf16 %v2280_v8  ;;  %v2282_v15 = vld [vmem:[%s192_s6 + $0x18] sm:$0xff]   ;;  %v2718_v42 = vld [vmem:[%s3199_s1 + $0x68] sm:$0xff]  }
  0x12   : > { %v2274_v16 = vunpack.c.l.bf16 %v2281_v9  ;;  %v2275_v17 = vunpack.c.h.bf16 %v2281_v9  ;;  %v2278_v25 = vunpack.c.l.bf16 %v2282_v15  ;;  %v2279_v26 = vunpack.c.h.bf16 %v2282_v15 }
  0x13   : > { %v220_v19 = vpack.c.bf16 %v2740_v18, %v2266_v11  ;;  %v221_v20 = vpack.c.bf16 %v2740_v18, %v2267_v12  ;;  %v222_v21 = vpack.c.bf16 %v2740_v18, %v2270_v13  ;;  %v223_v22 = vpack.c.bf16 %v2740_v18, %v2271_v14 }
  0x14   : > { %v224_v23 = vpack.c.bf16 %v2740_v18, %v2274_v16  ;;  %v225_v24 = vpack.c.bf16 %v2740_v18, %v2275_v17  ;;  %v226_v27 = vpack.c.bf16 %v2740_v18, %v2278_v25  ;;  %v227_v28 = vpack.c.bf16 %v2740_v18, %v2279_v26  ;;  %v781_v25 = vld [vmem:[#allocation2 + $0x8] sm:$0x80] }
  0x15   : > { %228 = vst.msk [vmem:[#allocation2 + $0x10] sm:$0xff] %vm199_vm0, %v220_v19  ;;  %229 = vst.msk [vmem:[#allocation2 + $0x18] sm:$0xff] %vm199_vm0, %v221_v20  ;;  %v389_v47 = vor.u32 %v387_v40, %v2865_v39 }
  0x16   : > { %230 = vst.msk [vmem:[#allocation2 + $0x20] sm:$0xff] %vm199_vm0, %v222_v21  ;;  %231 = vst.msk [vmem:[#allocation2 + $0x28] sm:$0xff] %vm199_vm0, %v223_v22 }
  0x17   : > { %232 = vst.msk [vmem:[#allocation2 + $0x30] sm:$0xff] %vm199_vm0, %v224_v23  ;;  %233 = vst.msk [vmem:[#allocation2 + $0x38] sm:$0xff] %vm199_vm0, %v225_v24  ;;  %v390_v59 = vsel %vm379_vm1, %v383_v48, %v389_v47  ;;  %v789_v47 = vshrl.u32 %v781_v25, 16  ;;  %v1092_v25 = vld [vmem:[#allocation2 + $0x50] sm:$0x1] }
  0x18   : > { %234 = vst.msk [vmem:[#allocation2 + $0x40] sm:$0xff] %vm199_vm0, %v226_v27  ;;  %235 = vst.msk [vmem:[#allocation2 + $0x48] sm:$0xff] %vm199_vm0, %v227_v28 }
  0x1c   : > { %v238_v30 = vld [vmem:[#allocation2 + $0x10] sm:$0xff]  ;;  %v2837_v31 = vld [vmem:[#allocation2 + $0x18] sm:$0xff] }
  0x1d   : > { %v2839_v32 = vld [vmem:[#allocation2 + $0x20] sm:$0xff]  ;;  %2383 = vmatmul.mubr.msk.bf16.vlgmr.msra.gmra.mrb[0].mxu1 %vm199_vm0, %v238_v30  ;;  %2462 = vmatprep.mubr.msk.bf16.mxu0 %vm199_vm0, %v238_v30  ;;  %v394_v37 = vshll.u32 %v238_v30, 16  ;;  %v2868_v41 = vld [vmem:[#allocation2 + $0x28] sm:$0xff]  ;;  %v391_v43 = vshrl.u32 %v238_v30, 16  ;;  %v596_v44 = vshll.u32 %v2837_v31, 16  ;;  %v600_v52 = vshrl.u32 %v2837_v31, 16 }
  0x1e   : > { %2463 = vmatmul.mubr.msk.bf16.vlgmr.msra.gmra.mrb[0].mxu0 %vm199_vm0, %v2837_v31  ;;  %2386 = vmatprep.mubr.msk.bf16.mxu1 %vm199_vm0, %v2837_v31  ;;  %v2871_v45 = vld [vmem:[#allocation2 + $0x30] sm:$0xff]  ;;  %v408_v53 = vshll.u32 %v2839_v32, 16  ;;  %v612_v54 = vshll.u32 %v2868_v41, 16  ;;  %v405_v56 = vshrl.u32 %v2839_v32, 16  ;;  %v2895_v58 = vld [vmem:[#allocation2 + $0x38] sm:$0xff]  ;;  %v616_v62 = vshrl.u32 %v2868_v41, 16 }
  0x1f   : > { %2479 = vmatpush3.bf16.msra.mxu0 %v2713_v5  ;;  %2466 = vmatprep.mubr.msk.bf16.mxu0 %vm199_vm0, %v2839_v32  ;;  %v2876_v46 = vrot.slane %v394_v37, 1  ;;  %v598_v49 = vrot.slane %v596_v44, 1  ;;  %v393_v55 = vrot.slane %v391_v43, 7  ;;  %v795_v57 = vrot.slane %v600_v52, 7  ;;  %v2908_v7 = vld [vmem:[#allocation2 + $0x48] sm:$0xff]  ;;  %v2917_v14 = vld [vmem:[#allocation2 + $0x40] sm:$0xff] }
  0x20   : > { %2480 = vmatprep.subr.bf16.mxu0 %v2715_v29  ;;  %2399 = vmatpush3.bf16.msra.mxu1 %v2714_v6  ;;  %v407_v61 = vrot.slane %v405_v56, 7  ;;  %v614_v2 = vrot.slane %v612_v54, 1  ;;  %v422_v3 = vshll.u32 %v2871_v45, 16  ;;  %v628_v5 = vshll.u32 %v2895_v58, 16 }
  0x21   : > { %2400 = vmatprep.subr.bf16.mxu1 %v2717_v33  ;;  %v1104_v50 = vor.u32 %v2876_v46, %v391_v43  ;;  %v1116_v6 = vrot.slane %v408_v53, 1  ;;  %v396_v8 = vor.u32 %v394_v37, %v393_v55  ;;  %v602_v9 = vor.u32 %v600_v52, %v598_v49 }
  0x22   : > { %v801_v11 = vrot.slane %v616_v62, 7  ;;  %v2914_v12 = vor.u32 %v795_v57, %v596_v44  ;;  %v419_v13 = vshrl.u32 %v2871_v45, 16  ;;  %v799_v16 = vor.u32 %v408_v53, %v407_v61 }
  0x23   : > { %2481 = vmatpush3.bf16.msra.mxu0 %v2715_v29  ;;  %v2901_v63 = vsel %vm579_vm2, %v1104_v50, %v598_v49  ;;  %v1120_v15 = vor.u32 %v1116_v6, %v405_v56  ;;  %v632_v17 = vshrl.u32 %v2895_v58, 16  ;;  %v433_v19 = vshrl.u32 %v2917_v14, 16 }
  0x24   : > { %2498 = vmatprep.subr.bf16.mxu0 %v2856_v35  ;;  %2401 = vmatpush3.bf16.msra.mxu1 %v2717_v33  ;;  %v1154_v20 = vshll.u32 %v2908_v7, 16  ;;  %v618_v21 = vor.u32 %v616_v62, %v614_v2  ;;  %v421_v22 = vrot.slane %v419_v13, 7  ;;  %v630_v23 = vrot.slane %v628_v5, 1 }
  0x25   : > { %2387 = vmatmul.mubr.msk.bf16.gmra.mrb[4].mxu1 %vm199_vm0, %v2839_v32  ;;  %2418 = vmatprep.subr.bf16.mxu1 %v2861_v38  ;;  %v1132_v24 = vrot.slane %v422_v3, 1  ;;  %v802_v26 = vor.u32 %v801_v11, %v612_v54  ;;  %v807_v27 = vrot.slane %v632_v17, 7  ;;  %v435_v28 = vrot.slane %v433_v19, 7 }
  0x26   : > { %2467 = vmatmul.mubr.msk.bf16.gmra.mrb[4].mxu0 %vm199_vm0, %v2868_v41  ;;  %2390 = vmatprep.mubr.msk.bf16.mxu1 %vm199_vm0, %v2868_v41  ;;  %v436_v29 = vshll.u32 %v2917_v14, 16  ;;  %v805_v30 = vor.u32 %v422_v3, %v421_v22  ;;  %v2926_v33 = vsel %vm579_vm2, %v602_v9, %v1116_v6  ;;  %v2929_v36 = vsel %vm579_vm2, %v1120_v15, %v614_v2  ;;  %v1610_v2 = vld [vmem:[#allocation2 + $0x58] sm:$0x1] }
  0x27   : > { %2470 = vmatprep.mubr.msk.bf16.mxu0 %vm199_vm0, %v2871_v45  ;;  %v1136_v37 = vor.u32 %v1132_v24, %v419_v13  ;;  %v1156_v43 = vrot.slane %v1154_v20, 1  ;;  %v1158_v44 = vshrl.u32 %v2908_v7, 16  ;;  %v2937_v48 = vsel %vm379_vm1, %v393_v55, %v2914_v12 }
  0x28   : > { %v634_v49 = vor.u32 %v632_v17, %v630_v23  ;;  %v808_v50 = vor.u32 %v807_v27, %v628_v5  ;;  %v397_v52 = vsel %vm379_vm1, %v2865_v39, %v396_v8  ;;  %v2947_v53 = vsel %vm579_vm2, %v618_v21, %v1132_v24 }
  0x29   : > { %v791_v54 = vrot.slane %v789_v47, 7  ;;  %v2950_v55 = vsel %vm379_vm1, %v795_v57, %v799_v16  ;;  %v2953_v56 = vsel %vm379_vm1, %v407_v61, %v802_v26  ;;  %v2959_v39 = vsel %vm579_vm2, %v1136_v37, %v630_v23  ;;  %v2720_v61 = vld [vmem:[%s3199_s1 + $0x70] sm:$0xff]  }
  0x2a   : > { %v2961_v62 = vrot.slane %v1158_v44, 7  ;;  %v1160_v57 = vor.u32 %v1158_v44, %v1156_v43  ;;  %v2973_v3 = vsel %vm379_vm1, %v421_v22, %v808_v50  ;;  %v811_v5 = vor.u32 %v436_v29, %v435_v28  ;;  %v2723_v26 = vld [vmem:[%s3199_s1 + $0x30] sm:$0xff]  }
  0x2b   : > { %v1674_v13 = vrot.slane %v1335_v0, 1  ;;  %v1680_v15 = vshll.u32 %v1610_v2, 16 }
  0x2c   : > { %v819_v6 = vor.u32 %v2961_v62, %v1154_v20  ;;  %v2977_v9 = vsel %vm379_vm1, %v807_v27, %v811_v5  ;;  %v1299_v27 = vld [vmem:[#allocation2 + $0x10] sm:$0x80] }
  0x2d   : > { %2391 = vmatmul.mubr.msk.bf16.gmra.mrb[8].mxu1 %vm199_vm0, %v2871_v45  ;;  %v2993_v21 = vsel %vm579_vm2, %v1160_v57, %v1674_v13  ;;  %v1678_v22 = vor.u32 %v1674_v13, %v1332_v60  ;;  %v1682_v23 = vrot.slane %v1680_v15, 1 }
  0x2e   : > { %2471 = vmatmul.mubr.msk.bf16.gmra.mrb[8].mxu0 %vm199_vm0, %v2895_v58  ;;  %2394 = vmatprep.mubr.msk.bf16.mxu1 %vm199_vm0, %v2895_v58  ;;  %v2982_v16 = vsel %vm379_vm1, %v435_v28, %v819_v6  ;;  %v1162_v28 = vshll.u32 %v1092_v25, 16 }
  0x2f   : > { %2482 = vmatprep.mubr.msk.bf16.mxu0 %vm199_vm0, %v2901_v63 }
  0x35   : > { %2395 = vmatmul.mubr.msk.bf16.gmra.mrb[12].mxu1 %vm199_vm0, %v2917_v14 }
  0x36   : > { %2483 = vmatmul.mubr.msk.bf16.vlgmr.msra.gmra.mrb[0].mxu0 %vm199_vm0, %v2926_v33  ;;  %2402 = vmatprep.mubr.msk.bf16.mxu1 %vm199_vm0, %v390_v59  ;;  %v2964_v59 = vsel %vm379_vm1, %v801_v11, %v805_v30  ;;  %v1658_v11 = vrot.slane %v436_v29, 1  ;;  %v1307_v29 = vshrl.u32 %v1299_v27, 16 }
  0x37   : > { %2499 = vmatpush3.bf16.msra.mxu0 %v2856_v35  ;;  %2486 = vmatprep.mubr.msk.bf16.mxu0 %vm199_vm0, %v2929_v36  ;;  %v2970_v35 = vsel %vm379_vm1, %v791_v54, %v396_v8  ;;  %v2721_v8 = vld [vmem:[%s3199_s1 + $0x28] sm:$0xff]  }
  0x38   : > { %2500 = vmatprep.subr.bf16.mxu0 %v2718_v42  ;;  %v2988_v17 = vsel %vm579_vm2, %v634_v49, %v1658_v11  ;;  %v2990_v20 = vor.u32 %v1658_v11, %v433_v19  ;;  %v3010_v19 = vsel %vm579_vm2, %v1678_v22, %v1682_v23  ;;  %v1309_v30 = vrot.slane %v1307_v29, 7 }
  0x3a   : > { %v3004_v24 = vsel %vm579_vm2, %v2990_v20, %v1156_v43  ;;  %v1312_v43 = vsel %vm379_vm1, %v1309_v30, %v2914_v12  ;;  %v573_v12 = vld [vmem:[#allocation2 + $0x48] sm:$0x1] }
  0x3b   : > { %2501 = vmatpush3.bf16.msra.mxu0 %v2718_v42  ;;  %v585_v42 = vrot.slane %v387_v40, 1  ;;  %v2722_v40 = vld [vmem:[%s3199_s1 + $0x78] sm:$0xff]  }
  0x3c   : > { %2518 = vmatprep.subr.bf16.mxu0 %v2720_v61 }
  0x3d   : > { %2403 = vmatmul.mubr.msk.bf16.vlgmr.msra.gmra.mrb[0].mxu1 %vm199_vm0, %v397_v52  ;;  %v586_v44 = vor.u32 %v585_v42, %v384_v34  ;;  %v2725_v34 = vld [vmem:[%s3199_s1 + $0x38] sm:$0xff]   ;;  %v2726_v52 = vld [vmem:[%s3199_s1 + $0x88] sm:$0xff]  }
  0x3e   : > { %2487 = vmatmul.mubr.msk.bf16.gmra.mrb[4].mxu0 %vm199_vm0, %v2947_v53  ;;  %2406 = vmatprep.mubr.msk.bf16.mxu1 %vm199_vm0, %v2937_v48 }
  0x3f   : > { %2490 = vmatprep.mubr.msk.bf16.mxu0 %vm199_vm0, %v2959_v39  ;;  %2419 = vmatpush3.bf16.msra.mxu1 %v2861_v38  ;;  %v1164_v38 = vrot.slane %v1162_v28, 1  ;;  %v591_v47 = vsel %vm579_vm2, %v586_v44, %v2876_v46  ;;  %v1334_v46 = vrot.slane %v1332_v60, 7  ;;  %v644_v60 = vshll.u32 %v573_v12, 16 }
  0x40   : > { %2420 = vmatprep.subr.bf16.mxu1 %v2721_v8 }
  0x41   : > { %v1165_v37 = vsel %vm579_vm2, %v1160_v57, %v1164_v38  ;;  %v646_v50 = vrot.slane %v644_v60, 1 }
  0x43   : > { %2421 = vmatpush3.bf16.msra.mxu1 %v2721_v8 }
  0x44   : > { %2438 = vmatprep.subr.bf16.mxu1 %v2723_v26 }
  0x45   : > { %2407 = vmatmul.mubr.msk.bf16.gmra.mrb[4].mxu1 %vm199_vm0, %v2950_v55 }
  0x46   : > { %2491 = vmatmul.mubr.msk.bf16.gmra.mrb[8].mxu0 %vm199_vm0, %v2988_v17  ;;  %2410 = vmatprep.mubr.msk.bf16.mxu1 %vm199_vm0, %v2953_v56 }
  0x47   : > { %2494 = vmatprep.mubr.msk.bf16.mxu0 %vm199_vm0, %v3004_v24 }
  0x4d   : > { %2411 = vmatmul.mubr.msk.bf16.gmra.mrb[8].mxu1 %vm199_vm0, %v2964_v59 }
  0x4e   : > { %2495 = vmatmul.mubr.msk.bf16.gmra.mrb[12].mxu0 %vm199_vm0, %v1165_v37  ;;  %2414 = vmatprep.mubr.msk.bf16.mxu1 %vm199_vm0, %v2973_v3 }
  0x4f   : > { %2502 = vmatprep.mubr.msk.bf16.mxu0 %vm199_vm0, %v1312_v43 }
  0x55   : > { %2415 = vmatmul.mubr.msk.bf16.gmra.mrb[12].mxu1 %vm199_vm0, %v2977_v9 }
  0x56   : > { %2503 = vmatmul.mubr.msk.bf16.vlgmr.msra.gmra.mrb[0].mxu0 %vm199_vm0, %v2950_v55  ;;  %2422 = vmatprep.mubr.msk.bf16.mxu1 %vm199_vm0, %v591_v47 }
  0x57   : > { %2519 = vmatpush3.bf16.msra.mxu0 %v2720_v61  ;;  %2506 = vmatprep.mubr.msk.bf16.mxu0 %vm199_vm0, %v2953_v56 }
  0x58   : > { %2520 = vmatprep.subr.bf16.mxu0 %v2722_v40 }
  0x5b   : > { %2521 = vmatpush3.bf16.msra.mxu0 %v2722_v40 }
  0x5c   : > { %2538 = vmatprep.subr.bf16.mxu0 %v2724_v10 }
  0x5d   : > { %2423 = vmatmul.mubr.msk.bf16.vlgmr.msra.gmra.mrb[0].mxu1 %vm199_vm0, %v2901_v63  ;;  %v1337_v63 = vor.u32 %v1335_v0, %v1334_v46  ;;  %v647_v0 = vsel %vm579_vm2, %v2990_v20, %v646_v50 }
  0x5e   : > { %2507 = vmatmul.mubr.msk.bf16.gmra.mrb[4].mxu0 %vm199_vm0, %v2964_v59  ;;  %2426 = vmatprep.mubr.msk.bf16.mxu1 %vm199_vm0, %v2926_v33 }
  0x5f   : > { %2510 = vmatprep.mubr.msk.bf16.mxu0 %vm199_vm0, %v2973_v3  ;;  %2439 = vmatpush3.bf16.msra.mxu1 %v2723_v26  ;;  %v1338_v49 = vsel %vm379_vm1, %v2961_v62, %v1337_v63 }
  0x60   : > { %2440 = vmatprep.subr.bf16.mxu1 %v2725_v34 }
  0x63   : > { %2441 = vmatpush3.bf16.msra.mxu1 %v2725_v34 }
  0x64   : > { %2573 = vmatprep.subr.bf16.mxu1 %v2782_v1 }
  0x65   : > { %2427 = vmatmul.mubr.msk.bf16.gmra.mrb[4].mxu1 %vm199_vm0, %v2929_v36 }
  0x66   : > { %2511 = vmatmul.mubr.msk.bf16.gmra.mrb[8].mxu0 %vm199_vm0, %v2977_v9  ;;  %2430 = vmatprep.mubr.msk.bf16.mxu1 %vm199_vm0, %v2947_v53 }
  0x67   : > { %2514 = vmatprep.mubr.msk.bf16.mxu0 %vm199_vm0, %v2982_v16 }
  0x6d   : > { %2431 = vmatmul.mubr.msk.bf16.gmra.mrb[8].mxu1 %vm199_vm0, %v2959_v39 }
  0x6e   : > { %2515 = vmatmul.mubr.msk.bf16.gmra.mrb[12].mxu0 %vm199_vm0, %v1338_v49  ;;  %2434 = vmatprep.mubr.msk.bf16.mxu1 %vm199_vm0, %v2988_v17 }
  0x6f   : > { %2522 = vmatprep.mubr.msk.bf16.mxu0 %vm199_vm0, %v2837_v31 }
  0x75   : > { %2435 = vmatmul.mubr.msk.bf16.gmra.mrb[12].mxu1 %vm199_vm0, %v647_v0 }
  0x76   : > { %2523 = vmatmul.mubr.msk.bf16.vlgmr.msra.gmra.mrb[0].mxu0 %vm199_vm0, %v2839_v32  ;;  %2442 = vmatprep.mubr.msk.bf16.mxu1 %vm199_vm0, %v2970_v35  ;;  %v2741_v32 = vmov 0.0|0.0  }
  0x77   : > { %2539 = vmatpush3.bf16.msra.mxu0 %v2724_v10  ;;  %2526 = vmatprep.mubr.msk.bf16.mxu0 %vm199_vm0, %v2868_v41 }
  0x78   : > { %2540 = vmatprep.subr.bf16.mxu0 %v2726_v52 }
  0x7b   : > { %2541 = vmatpush3.bf16.msra.mxu0 %v2726_v52 }
  0x7d   : > { %2443 = vmatmul.mubr.msk.bf16.vlgmr.msra.gmra.mrb[0].mxu1 %vm199_vm0, %v2937_v48 }
  0x7e   : > { %2527 = vmatmul.mubr.msk.bf16.gmra.mrb[4].mxu0 %vm199_vm0, %v2871_v45  ;;  %2446 = vmatprep.mubr.msk.bf16.mxu1 %vm199_vm0, %v2950_v55 }
  0x7f   : > { %2530 = vmatprep.mubr.msk.bf16.mxu0 %vm199_vm0, %v2895_v58  ;;  %2575 = vmatpush3.bf16.msra.mxu1 %v2782_v1  ;;  %v1840_v1 = vld [vmem:[%s3200_s2] sm:$0xff] }
  0x80   : > { %2574 = vmatprep.subr.bf16.mxu1 %v2795_v4 }
  0x83   : > { %2576 = vmatpush3.bf16.msra.mxu1 %v2795_v4  ;;  %v1841_v4 = vld [vmem:[%s3200_s2 + $0x8] sm:$0xff] }
  0x84   : > { %v2571_v31 = vpack.c.bf16 %v1841_v4, %v1840_v1  ;;  %2570 = vmatprep.subr.bf16.mxu1 %v2741_v32  ;;  %v1916_v32 = vld [vmem:[%s3201_s3] sm:$0x1] }
  0x85   : > { %2447 = vmatmul.mubr.msk.bf16.gmra.mrb[4].mxu1 %vm199_vm0, %v2953_v56 }
  0x86   : > { %2531 = vmatmul.mubr.msk.bf16.gmra.mrb[8].mxu0 %vm199_vm0, %v2917_v14  ;;  %2450 = vmatprep.mubr.msk.bf16.mxu1 %vm199_vm0, %v2964_v59 }
  0x87   : > { %2534 = vmatprep.mubr.msk.bf16.mxu0 %vm199_vm0, %v2908_v7 }
  0x8d   : > { %2451 = vmatmul.mubr.msk.bf16.gmra.mrb[8].mxu1 %vm199_vm0, %v2973_v3 }
  0x8e   : > { %2535 = vmatmul.mubr.msk.bf16.gmra.mrb[12].mxu0 %vm199_vm0, %v2889_v51  ;;  %2454 = vmatprep.mubr.msk.bf16.mxu1 %vm199_vm0, %v2977_v9 }
  0x8f   : > { %2542 = vmatprep.mubr.msk.bf16.mxu0 %vm199_vm0, %v2926_v33 }
  0x95   : > { %2455 = vmatmul.mubr.msk.bf16.gmra.mrb[12].mxu1 %vm199_vm0, %v2982_v16 }
  0x96   : > { %2543 = vmatmul.mubr.msk.bf16.vlgmr.msra.gmra.mrb[0].mxu0 %vm199_vm0, %v2929_v36  ;;  %2474 = vmatprep.mubr.msk.bf16.mxu1 %vm199_vm0, %v2917_v14 }
  0x97   : > { %2546 = vmatprep.mubr.msk.bf16.mxu0 %vm199_vm0, %v2947_v53 }
  0x9e   : > { %2547 = vmatmul.mubr.msk.bf16.gmra.mrb[4].mxu0 %vm199_vm0, %v2959_v39 }
  0x9f   : > { %2550 = vmatprep.mubr.msk.bf16.mxu0 %vm199_vm0, %v2988_v17 }
  0xa1   : > { %2475 = vmatmul.mubr.msk.bf16.vlgmr.msra.gmra.mrb[12].mxu1 %vm199_vm0, %v2908_v7 }
  0xa2   : > { %2572 = vmatpush3.bf16.msra.mxu1 %v2571_v31  ;;  %2562 = vmatprep.mubr.msk.f32.mxu1 %vm2742_vm3, %v2740_v18 }
  0xa3   : > { %2565 = vmatprep.subr.mxu1 %v2740_v18 }
  0xa6   : > { %2551 = vmatmul.mubr.msk.bf16.gmra.mrb[8].mxu0 %vm199_vm0, %v3004_v24 }
  0xa7   : > { %2554 = vmatprep.mubr.msk.bf16.mxu0 %vm199_vm0, %v2993_v21 }
  0xae   : > { %2555 = vmatmul.mubr.msk.bf16.gmra.mrb[12].mxu0 %vm199_vm0, %v3010_v19 }
 0x150   : > { %v2444_v41 = vpop.f32.mrb[0].mxu1 }
 0x151   : > { %v891_v45 = vpop.f32.mrb[1].mxu1 }
 0x152   : > { %v2445_v51 = vpop.f32.mrb[2].mxu1 }
 0x153   : > { %v894_v58 = vpop.f32.mrb[3].mxu1 }
 0x158   : > { %v2448_v7 = vpop.f32.mrb[4].mxu1 }
 0x159   : > { %v905_v14 = vpop.f32.mrb[5].mxu1 }
 0x15a   : > { %v2449_v33 = vpop.f32.mrb[6].mxu1 }
 0x15b   : > { %v908_v36 = vpop.f32.mrb[7].mxu1 }
 0x160   : > { %v2452_v48 = vpop.f32.mrb[8].mxu1 }
 0x161   : > { %v919_v53 = vpop.f32.mrb[9].mxu1 }
 0x162   : > { %v2453_v54 = vpop.f32.mrb[10].mxu1 }
 0x163   : > { %v922_v55 = vpop.f32.mrb[11].mxu1 }
 0x169   : > { %v2544_v56 = vpop.f32.mrb[0].mxu0 }
 0x16a   : > { %v3152_v39 = vadd.f32 %v2544_v56, %v2444_v41  ;;  %v1754_v62 = vpop.f32.mrb[1].mxu0 }
 0x16b   : > { %v3154_v59 = vadd.f32 %v1754_v62, %v891_v45  ;;  %v2545_v2 = vpop.f32.mrb[2].mxu0 }
 0x16c   : > { %v1757_v57 = vpop.f32.mrb[3].mxu0  ;;  %v1819_v13 = vsel %vm1817_vm4, %v3152_v39, 0.0 }
 0x16d   : > { %v1818_v15 = vsel %vm1817_vm4, %v3154_v59, 0.0 }
 0x16e   : > { %v1820_v21 = vadd.f32 %v1819_v13, %v1818_v15 }
 0x171   : > { %v2548_v61 = vpop.f32.mrb[4].mxu0 }
 0x172   : > { %v3156_v35 = vadd.f32 %v2548_v61, %v2448_v7  ;;  %v1768_v3 = vpop.f32.mrb[5].mxu0 }
 0x173   : > { %v3158_v5 = vadd.f32 %v1768_v3, %v905_v14  ;;  %v2549_v6 = vpop.f32.mrb[6].mxu0 }
 0x174   : > { %v2476_v9 = vpop.f32.mrb[12].mxu1  ;;  %v1771_v11 = vpop.f32.mrb[7].mxu0  ;;  %v1823_v28 = vsel %vm1817_vm4, %v3156_v35, 0.0 }
 0x175   : > { %v1063_v16 = vpop.f32.mrb[13].mxu1  ;;  %v1821_v17 = vsel %vm1817_vm4, %v3158_v5, 0.0 }
 0x176   : > { %v2477_v8 = vpop.f32.mrb[14].mxu1  ;;  %v1822_v23 = vadd.f32 %v1821_v17, %v1820_v21 }
 0x177   : > { %v1066_v20 = vpop.f32.mrb[15].mxu1 }
 0x178   : > { %v1824_v38 = vadd.f32 %v1823_v28, %v1822_v23 }
 0x179   : > { %v2552_v22 = vpop.f32.mrb[8].mxu0 }
 0x17a   : > { %v2581_v24 = vadd.f32 %v2552_v22, %v2452_v48  ;;  %v1782_v19 = vpop.f32.mrb[9].mxu0  ;;  %v2001_v48 = vlaneseq }
 0x17b   : > { %v2582_v25 = vadd.f32 %v1782_v19, %v919_v53  ;;  %v2553_v26 = vpop.f32.mrb[10].mxu0 }
 0x17c   : > { %v1785_v27 = vpop.f32.mrb[11].mxu0  ;;  %v1827_v44 = vsel %vm1817_vm4, %v2581_v24, 0.0  ;;  %v2002_v53 = vshrl.u32 %v2001_v48, 7 }
 0x17d   : > { %v1825_v29 = vsel %vm1817_vm4, %v2582_v25, 0.0 }
 0x17e   : > { %v1826_v30 = vadd.f32 %v1825_v29, %v1824_v38  ;;  %v2003_v54 = vsub.s32 0, %v2002_v53 }
 0x180   : > { %v1828_v10 = vadd.f32 %v1827_v44, %v1826_v30 }
 0x181   : > { %v2556_v37 = vpop.f32.mrb[12].mxu0 }
 0x182   : > { %v2583_v42 = vadd.f32 %v2556_v37, %v2476_v9  ;;  %v1796_v43 = vpop.f32.mrb[13].mxu0 }
 0x183   : > { %v2584_v47 = vadd.f32 %v1796_v43, %v1063_v16  ;;  %v2557_v40 = vpop.f32.mrb[14].mxu0 }
 0x184   : > { %v1799_v34 = vpop.f32.mrb[15].mxu0  ;;  %v1831_v12 = vsel %vm1817_vm4, %v2583_v42, 0.0 }
 0x185   : > { %v1829_v46 = vsel %vm1817_vm4, %v2584_v47, 0.0 }
 0x186   : > { %v1830_v63 = vadd.f32 %v1829_v46, %v1828_v10 }
 0x188   : > { %v1832_v60 = vadd.f32 %v1831_v12, %v1830_v63 }
 0x18a   : > { %v1833_v49 = vrot.slane %v1832_v60, 4 }
 0x18c   : > { %v1834_v50 = vadd.f32 %v1833_v49, %v1832_v60 }
 0x18e   : > { %v1835_v0 = vrot.slane %v1834_v50, 2 }
 0x190   : > { %v1836_v52 = vadd.f32 %v1835_v0, %v1834_v50 }
 0x192   : > { %v1837_v1 = vrot.slane %v1836_v52, 1 }
 0x194   : > { %v1838_v4 = vadd.f32 %v1837_v1, %v1836_v52 }
 0x196   : > { %v1839_v31 = vmul.f32 0.015625, %v1838_v4 }
 0x198   : > { %2563 = vmatmul.mubr.msk.f32.vlgmr.msra.gmra.mrb[16].mxu1 %vm1817_vm4, %v1839_v31 }
 0x199   : > { %2566 = vmatpush3.msk.msra.mxu1 %vm1921_vm5, %v1916_v32  ;;  %2567 = vmatprep.mubr.msk.f32.mxu1 %vm2742_vm3, %v2740_v18 }
 0x26b   : > { %v1911_v41 = vpop.f32.mrb[16].mxu1 }
 0x26c   : > { %v1915_v45 = vmax.f32 %v1911_v41, 0.0  ;;  %v2564_v51 = vpop.f32.mrb[17].mxu1 }
 0x26e   : > { %2568 = vmatmul.mubr.msk.f32.vlgmr.msra.gmra.mrb[18].mxu1 %vm1917_vm6, %v1915_v45 }
 0x341   : > { %v1991_v58 = vpop.f32.mrb[18].mxu1 }
 0x342   : > { %v2243_v7 = vmul.f32 -1.442695, %v1991_v58  ;;  %v2569_v14 = vpop.f32.mrb[19].mxu1 }
 0x344   : > { %2727 = vpow2.f32 %v2243_v7 }
 0x34e   : > { %v2728_v33 = vpop.eup %2727 }
 0x34f   : > { %v1998_v36 = vadd.f32 1.0, %v2728_v33 }
 0x351   : > { %2729 = vrcp.f32 %v1998_v36 }
 0x35b   : > { %v2730_v55 = vpop.eup %2729 }
 0x35c   : > { %v2004_v56 = vrot.slane %v2730_v55, %v2003_v54 }
 0x35e   : > { %v2005_v18 = vmul.f32 %v3154_v59, %v2004_v56  ;;  %v2006_v62 = vmul.f32 %v3152_v39, %v2004_v56  ;;  %v2007_v2 = vmul.f32 %v3158_v5, %v2004_v56  ;;  %v2008_v57 = vmul.f32 %v3156_v35, %v2004_v56 }
 0x35f   : > { %v2009_v61 = vmul.f32 %v2582_v25, %v2004_v56  ;;  %v2010_v3 = vmul.f32 %v2581_v24, %v2004_v56  ;;  %v2011_v6 = vmul.f32 %v2584_v47, %v2004_v56  ;;  %v2012_v9 = vmul.f32 %v2583_v42, %v2004_v56 }
 0x360   : > { %v2256_v11 = vpack.c.bf16 %v2005_v18, %v2005_v18  ;;  %v2257_v13 = vpack.c.bf16 %v2006_v62, %v2006_v62  ;;  %v2258_v15 = vpack.c.bf16 %v2007_v2, %v2007_v2  ;;  %v2259_v16 = vpack.c.bf16 %v2008_v57, %v2008_v57 }
 0x361   : > { %v2260_v59 = vpack.c.bf16 %v2009_v61, %v2009_v61  ;;  %v2261_v8 = vpack.c.bf16 %v2010_v3, %v2010_v3  ;;  %v2262_v39 = vpack.c.bf16 %v2011_v6, %v2011_v6  ;;  %v2263_v17 = vpack.c.bf16 %v2012_v9, %v2012_v9 }
 0x362   : > { %2046 = vst.msk [vmem:[%s197_s18] sm:$0xf] %vm2045_vm7, %v2256_v11  ;;  %2047 = vst.msk [vmem:[%s197_s18 + $0x4] sm:$0xf] %vm2045_vm7, %v2257_v13 }
 0x363   : > { %2048 = vst.msk [vmem:[%s197_s18 + $0x8] sm:$0xf] %vm2045_vm7, %v2258_v15  ;;  %2049 = vst.msk [vmem:[%s197_s18 + $0xc] sm:$0xf] %vm2045_vm7, %v2259_v16 }
 0x364   : > { %2050 = vst.msk [vmem:[%s197_s18 + $0x10] sm:$0xf] %vm2045_vm7, %v2260_v59  ;;  %2051 = vst.msk [vmem:[%s197_s18 + $0x14] sm:$0xf] %vm2045_vm7, %v2261_v8 }
 0x365   : > { %2052 = vst.msk [vmem:[%s197_s18 + $0x18] sm:$0xf] %vm2045_vm7, %v2262_v39  ;;  %2053 = vst.msk [vmem:[%s197_s18 + $0x1c] sm:$0xf] %vm2045_vm7, %v2263_v17 }
 0x366 PF: > { %s14_s15 = sadd.s32 1, %s2737_s15  }
 0x367   : > { %p11_p4 = scmp.ge.s32.totalorder %s14_s15, 4  }
 0x369   :  { %13 = sbr.rel (!%p11_p4) target bundleno = 1 (0x1), region = 74 }

</bundles_post_ra>
